<compile_context>
chip_gen: v6e
topology: v6e:2x2x1
jax: 0.10.0
libtpu: 0.0.40
codegen_flags: <defaults>
</compile_context>

<pallas_src>
import functools
from typing import NamedTuple

import jax
import jax.numpy as jnp
import numpy as np
from jax import lax
from jax.experimental import pallas as pl
from jax.experimental.pallas import tpu as pltpu


class Config(NamedTuple):
    lstm_hidden_size: int
    nlayers: int
    dropout: float
    word_pad: float


# ----------------------------------------------------------------------------
# Tuning helpers
# ----------------------------------------------------------------------------
def _vmem_limit_bytes() -> int:
    """Generation-aware VMEM budget, leaving ~25% headroom for compiler scratch."""
    try:
        info = pltpu.get_tpu_info()
        cap = getattr(info, "vmem_capacity_bytes", None)
        if cap:
            return (int(cap) * 3) // 4      # ~48 MiB on v7x, ~96 MiB on v5e/v6e
    except Exception:
        pass
    return 32 * 1024 * 1024                 # conservative cross-generation default


def _pick_chunk(T, B_pad, H, chunk, vmem_limit, gate_itemsize):
    """Cap the per-grid-step chunk so the double-buffered time streams fit VMEM."""
    per_t = 2 * (B_pad * 4 * H * gate_itemsize) + 2 * (B_pad * H * 4)
    cap = max(1, (vmem_limit // 3) // max(1, 2 * per_t))
    return int(max(1, min(chunk, T, cap)))


def _pick_unroll(K, B_pad, H):
    """Unroll factor keyed on tile size: keep ~<=32 vregs of live gate tiles."""
    gate_tile_vregs = max(1, (B_pad * 8 * H * 4) // 4096)
    return int(min(K, max(1, 32 // gate_tile_vregs)))


def _block_diag(w_f, w_b):
    """[[W_f, 0], [0, W_b]] of shape (2H, 8H) for the fused fwd+bwd MXU push."""
    H, G = w_f.shape
    top = jnp.concatenate([w_f, jnp.zeros((H, G), w_f.dtype)], axis=1)
    bot = jnp.concatenate([jnp.zeros((H, G), w_b.dtype), w_b], axis=1)
    return jnp.concatenate([top, bot], axis=0)


# ----------------------------------------------------------------------------
# Hoisted input projection: one large batched matmul over all timesteps.
# `feats` is a list of [T, B, Di] arrays (layer 0: [x]; layers>0: [outf, outb]
# -> avoids materializing the inter-layer concat; W_ih is sliced to match).
# Result is stored in `gate_dtype` (bf16 in production) to halve HBM/VMEM.
# ----------------------------------------------------------------------------
def _project_gates(feats, wih, bias, compute_dtype, gate_dtype):
    out = None
    off = 0
    for f in feats:
        Di = f.shape[-1]
        w = wih[off:off + Di]                      # static slice [Di, 4H]
        term = jnp.einsum('tbd,dg->tbg',
                          f.astype(compute_dtype), w.astype(compute_dtype),
                          preferred_element_type=jnp.float32)
        out = term if out is None else out + term
        off += Di
    return (out + bias.astype(jnp.float32)).astype(gate_dtype)   # [T, B, 4H]


# ----------------------------------------------------------------------------
# Pallas kernel: one bidirectional LSTM layer, grid over time *chunks*.
# Each grid step processes K timesteps: forward positions c*K+j (ascending)
# and backward positions (nc-1-c)*K + (K-1-j) (descending). h/c state lives in
# registers within a chunk and VMEM scratch across chunks. Input gates
# (x @ W_ih + b) are precomputed and streamed in (bf16).
# ----------------------------------------------------------------------------
def _bilstm_recurrent_kernel(
    gf_ref, gb_ref, len_ref, whh_ref,
    outf_ref, outb_ref, hf_out, cf_out, hb_out, cb_out,
    hf_s, cf_s, hb_s, cb_s,
    *, word_pad: float, chunk: int, hidden: int, compute_dtype, fuse_dirs: bool,
    unroll: int,
):
    c = pl.program_id(0)
    nc = pl.num_programs(0)
    H = hidden
    K = chunk
    f32 = jnp.float32

    @pl.when(c == 0)
    def _init():
        hf_s[...] = jnp.zeros_like(hf_s)
        cf_s[...] = jnp.zeros_like(cf_s)
        hb_s[...] = jnp.zeros_like(hb_s)
        cb_s[...] = jnp.zeros_like(cb_s)

    lengths = len_ref[...]                               # (B, 1) int32
    B = lengths.shape[0]
    pad_tile = jnp.full((B, H), word_pad, f32)           # hoisted broadcast
    base_f = c * K                                       # fwd global offset
    base_b = (nc - 1 - c) * K                            # bwd global offset

    def nonlin(gates, c_prev):
        i = jax.nn.sigmoid(gates[:, 0 * H:1 * H])
        f = jax.nn.sigmoid(gates[:, 1 * H:2 * H])
        g = jnp.tanh(gates[:, 2 * H:3 * H])
        o = jax.nn.sigmoid(gates[:, 3 * H:4 * H])
        c_new = f * c_prev + i * g
        h_new = o * jnp.tanh(c_new)
        return h_new, c_new

    def step(j, carry):
        h_f, c_f, h_b, c_b = carry

        # --- recurrent matmul(s): the only op on the serial critical path ---
        if fuse_dirs:
            # one block-diagonal MXU push for both directions
            h_cat = jnp.concatenate([h_f, h_b], axis=-1).astype(compute_dtype)
            rec = jnp.dot(h_cat, whh_ref[...], preferred_element_type=f32)  # (B, 8H)
            rec_f = rec[:, :4 * H]
            rec_b = rec[:, 4 * H:]
        else:
            rec_f = jnp.dot(h_f.astype(compute_dtype), whh_ref[0],
                            preferred_element_type=f32)
            rec_b = jnp.dot(h_b.astype(compute_dtype), whh_ref[1],
                            preferred_element_type=f32)

        r = K - 1 - j
        gf = gf_ref[j].astype(f32) + rec_f               # f32 accumulate
        gb = gb_ref[r].astype(f32) + rec_b

        mask_f = (base_f + j) < lengths                  # (B, 1) bool
        mask_b = (base_b + r) < lengths

        h_f_new, c_f_new = nonlin(gf, c_f)
        h_b_new, c_b_new = nonlin(gb, c_b)

        outf_ref[j] = jnp.where(mask_f, h_f_new, pad_tile).astype(outf_ref.dtype)
        outb_ref[r] = jnp.where(mask_b, h_b_new, pad_tile).astype(outb_ref.dtype)

        # freeze state past each sequence's length (packed-sequence semantics)
        h_f = jnp.where(mask_f, h_f_new, h_f)
        c_f = jnp.where(mask_f, c_f_new, c_f)
        h_b = jnp.where(mask_b, h_b_new, h_b)
        c_b = jnp.where(mask_b, c_b_new, c_b)
        return (h_f, c_f, h_b, c_b)

    carry0 = (hf_s[...], cf_s[...], hb_s[...], cb_s[...])
    h_f, c_f, h_b, c_b = lax.fori_loop(0, K, step, carry0, unroll=unroll)

    # persist state across grid steps (scratch touched only at chunk edges)
    hf_s[...] = h_f
    cf_s[...] = c_f
    hb_s[...] = h_b
    cb_s[...] = c_b

    # final hidden/cell states written only once, at the last grid step
    @pl.when(c == nc - 1)
    def _final():
        hf_out[...] = h_f
        cf_out[...] = c_f
        hb_out[...] = h_b
        cb_out[...] = c_b


def _run_bilstm_layer(gates_f, gates_b, lengths2d, whh, *, word_pad, hidden,
                      chunk, compute_dtype, fuse_dirs, unroll, out_dtype,
                      vmem_limit):
    """gates_{f,b}: [T_pad, B, 4H] (precomputed x@W_ih + b), whh: fused (2H,8H)
    block-diagonal or stacked (2,H,4H)."""
    T_pad, B, _ = gates_f.shape
    H = hidden
    K = chunk
    nc = T_pad // K

    if fuse_dirs:
        whh_spec = pl.BlockSpec((2 * H, 8 * H), lambda c: (0, 0),
                                pipeline_mode=pl.Buffered(1))
    else:
        whh_spec = pl.BlockSpec((2, H, 4 * H), lambda c: (0, 0, 0),
                                pipeline_mode=pl.Buffered(1))

    grid_spec = pltpu.PrefetchScalarGridSpec(
        num_scalar_prefetch=0,
        grid=(nc,),
        in_specs=[
            pl.BlockSpec((K, B, 4 * H), lambda c: (c, 0, 0)),            # gates fwd
            pl.BlockSpec((K, B, 4 * H), lambda c: (nc - 1 - c, 0, 0)),   # gates bwd
            pl.BlockSpec((B, 1), lambda c: (0, 0),                       # lengths
                         pipeline_mode=pl.Buffered(1)),
            whh_spec,                                                    # W_hh
        ],
        out_specs=[
            pl.BlockSpec((K, B, H), lambda c: (c, 0, 0)),                # fwd outputs
            pl.BlockSpec((K, B, H), lambda c: (nc - 1 - c, 0, 0)),       # bwd outputs
            pl.BlockSpec((B, H), lambda c: (0, 0)),                      # h fwd
            pl.BlockSpec((B, H), lambda c: (0, 0)),                      # c fwd
            pl.BlockSpec((B, H), lambda c: (0, 0)),                      # h bwd
            pl.BlockSpec((B, H), lambda c: (0, 0)),                      # c bwd
        ],
        scratch_shapes=[pltpu.VMEM((B, H), jnp.float32) for _ in range(4)],
    )

    out_shapes = (
        jax.ShapeDtypeStruct((T_pad, B, H), out_dtype),
        jax.ShapeDtypeStruct((T_pad, B, H), out_dtype),
        jax.ShapeDtypeStruct((B, H), jnp.float32),
        jax.ShapeDtypeStruct((B, H), jnp.float32),
        jax.ShapeDtypeStruct((B, H), jnp.float32),
        jax.ShapeDtypeStruct((B, H), jnp.float32),
    )

    kernel = functools.partial(
        _bilstm_recurrent_kernel,
        word_pad=float(word_pad), chunk=K, hidden=H,
        compute_dtype=compute_dtype, fuse_dirs=fuse_dirs, unroll=unroll)

    return pl.pallas_call(
        kernel,
        grid_spec=grid_spec,
        out_shape=out_shapes,
        compiler_params=pltpu.CompilerParams(
            dimension_semantics=("arbitrary",),
            vmem_limit_bytes=vmem_limit),
    )(gates_f, gates_b, lengths2d, whh)


# ----------------------------------------------------------------------------
# Wrapper reproducing BiLSTM.forward
# ----------------------------------------------------------------------------
def bilstm_forward(src, src_lengths, layer_params, config: Config, *,
                   chunk=32, compute_dtype=jnp.bfloat16, unroll=None):
    """
    src: [B, S, D] float32, src_lengths: [B] int (concrete).
    Returns (outputs [B, T_max, 2H], (h_t [B, 2H], c_t [B, 2H])).
    """
    B, S, D = src.shape
    H = config.lstm_hidden_size
    T = max(int(np.max(np.asarray(src_lengths))), 1)   # pad_packed_sequence length
    B_pad = ((B + 7) // 8) * 8                         # sublane-dense batch

    gate_dtype = compute_dtype                         # bf16 gate streams
    vmem_limit = _vmem_limit_bytes()
    K = _pick_chunk(T, B_pad, H, chunk, vmem_limit, jnp.dtype(gate_dtype).itemsize)
    nc = -(-T // K)
    T_pad = nc * K
    u = unroll if unroll is not None else _pick_unroll(K, B_pad, H)
    # Fuse fwd+bwd recurrent matmuls into one block-diagonal MXU push when the
    # fused contraction (2H) still fits a single v6e/v7x MXU tile.
    fuse_dirs = (2 * H) <= 256

    x = jnp.transpose(src[:, :T, :], (1, 0, 2)).astype(jnp.float32)  # [T, B, D]
    if B_pad > B:
        x = jnp.pad(x, ((0, 0), (0, B_pad - B), (0, 0)))
    lengths2d = jnp.zeros((B_pad, 1), jnp.int32).at[:B, 0].set(
        jnp.asarray(src_lengths, jnp.int32))

    # TODO(synk): in_dropout / out_dropout are identity (eval mode).
    feats = [x]
    h_parts = c_parts = None
    for layer in range(config.nlayers):
        p = layer_params[layer]
        is_last = layer == config.nlayers - 1
        out_dtype = jnp.float32 if is_last else compute_dtype
        gates_f = _project_gates(feats, p["wih_f"], p["b_f"], compute_dtype, gate_dtype)
        gates_b = _project_gates(feats, p["wih_b"], p["b_b"], compute_dtype, gate_dtype)
        if T_pad > T:   # pad time to a multiple of K; padded steps are masked
            padw = ((0, T_pad - T), (0, 0), (0, 0))
            gates_f = jnp.pad(gates_f, padw)
            gates_b = jnp.pad(gates_b, padw)
        if fuse_dirs:
            whh = _block_diag(p["whh_f"], p["whh_b"]).astype(compute_dtype)
        else:
            whh = jnp.stack([p["whh_f"], p["whh_b"]]).astype(compute_dtype)
        outf, outb, hf, cf, hb, cb = _run_bilstm_layer(
            gates_f, gates_b, lengths2d, whh,
            word_pad=config.word_pad, hidden=H, chunk=K,
            compute_dtype=compute_dtype, fuse_dirs=fuse_dirs, unroll=u,
            out_dtype=out_dtype, vmem_limit=vmem_limit)
        feats = [outf[:T], outb[:T]]                   # no inter-layer concat
        h_parts, c_parts = (hf, hb), (cf, cb)

    outputs = jnp.transpose(jnp.concatenate(feats, axis=-1), (1, 0, 2))[:B]
    h_t = jnp.concatenate(h_parts, axis=-1)[:B]
    c_t = jnp.concatenate(c_parts, axis=-1)[:B]
    return outputs, (h_t, c_t)


# ----------------------------------------------------------------------------
# Pure-JAX reference (mirrors the kernel math: hoisted projection, gate dtype
# rounding, intermediate-layer output dtype, f32 state)
# ----------------------------------------------------------------------------
def _ref_layer(feats, lengths, p, word_pad, compute_dtype, gate_dtype, out_dtype):
    T, B = feats[0].shape[:2]
    H = p["whh_f"].shape[0]
    gates_f = _project_gates(feats, p["wih_f"], p["b_f"],
                             compute_dtype, gate_dtype).astype(jnp.float32)
    gates_b = _project_gates(feats, p["wih_b"], p["b_b"],
                             compute_dtype, gate_dtype).astype(jnp.float32)
    whh_f = p["whh_f"].astype(compute_dtype)
    whh_b = p["whh_b"].astype(compute_dtype)

    def cell(gin, h, c, whh):
        gates = gin + jnp.dot(h.astype(compute_dtype), whh,
                              preferred_element_type=jnp.float32)
        i = jax.nn.sigmoid(gates[:, :H]); f = jax.nn.sigmoid(gates[:, H:2 * H])
        g = jnp.tanh(gates[:, 2 * H:3 * H]); o = jax.nn.sigmoid(gates[:, 3 * H:])
        c_new = f * c + i * g
        return o * jnp.tanh(c_new), c_new

    lens = lengths.reshape(B, 1)
    hf = cf = hb = cb = jnp.zeros((B, H), jnp.float32)
    outf = [None] * T; outb = [None] * T
    for t in range(T):
        mf = t < lens
        hn, cn = cell(gates_f[t], hf, cf, whh_f)
        hf = jnp.where(mf, hn, hf); cf = jnp.where(mf, cn, cf)
        outf[t] = jnp.where(mf, hn, word_pad).astype(out_dtype)
        q = T - 1 - t
        mb = q < lens
        hnb, cnb = cell(gates_b[q], hb, cb, whh_b)
        hb = jnp.where(mb, hnb, hb); cb = jnp.where(mb, cnb, cb)
        outb[q] = jnp.where(mb, hnb, word_pad).astype(out_dtype)
    return jnp.stack(outf), jnp.stack(outb), (hf, hb), (cf, cb)


def bilstm_ref(src, src_lengths, layer_params, config: Config,
               compute_dtype=jnp.bfloat16):
    B, S, D = src.shape
    T = max(int(np.max(np.asarray(src_lengths))), 1)
    x = jnp.transpose(src[:, :T, :], (1, 0, 2)).astype(jnp.float32)
    lens = jnp.asarray(src_lengths, jnp.int32)
    gate_dtype = compute_dtype
    feats = [x]
    h = c = None
    for layer in range(config.nlayers):
        is_last = layer == config.nlayers - 1
        out_dtype = jnp.float32 if is_last else compute_dtype
        outf, outb, h, c = _ref_layer(feats, lens, layer_params[layer],
                                      config.word_pad, compute_dtype,
                                      gate_dtype, out_dtype)
        feats = [outf, outb]
    out = jnp.transpose(jnp.concatenate(
        [feats[0].astype(jnp.float32), feats[1].astype(jnp.float32)], -1), (1, 0, 2))
    return out, (jnp.concatenate(h, -1), jnp.concatenate(c, -1))


# ----------------------------------------------------------------------------
# Deterministic parameter init (nn.LSTM shapes; uniform(-k, k), k = 1/sqrt(H))
# Weights are stored pre-transposed: W_ih -> [D, 4H], W_hh -> [H, 4H].
# ----------------------------------------------------------------------------
def init_params(key, input_size, hidden_size, nlayers):
    k = 1.0 / np.sqrt(hidden_size)
    params = []
    for layer in range(nlayers):
        d_in = input_size if layer == 0 else 2 * hidden_size
        layer_p = {}
        for direction in ("f", "b"):
            key, k1, k2, k3, k4 = jax.random.split(key, 5)
            w_ih = jax.random.uniform(k1, (4 * hidden_size, d_in), jnp.float32, -k, k)
            w_hh = jax.random.uniform(k2, (4 * hidden_size, hidden_size), jnp.float32, -k, k)
            b_ih = jax.random.uniform(k3, (4 * hidden_size,), jnp.float32, -k, k)
            b_hh = jax.random.uniform(k4, (4 * hidden_size,), jnp.float32, -k, k)
            layer_p[f"wih_{direction}"] = w_ih.T                      # [D, 4H]
            layer_p[f"whh_{direction}"] = w_hh.T                      # [H, 4H]
            layer_p[f"b_{direction}"] = (b_ih + b_hh).reshape(1, -1)  # [1, 4H]
        params.append(layer_p)
    return params


if __name__ == "__main__":
    # small shapes: batch=2, seq=8, input_size=16, hidden=32, 2 layers
    B, S, D = 2, 8, 16
    config = Config(lstm_hidden_size=32, nlayers=2, dropout=0.0, word_pad=-1.0)

    key = jax.random.PRNGKey(0)
    key, k_src = jax.random.split(key)
    src = jax.random.normal(k_src, (B, S, D), jnp.float32)
    src_lengths = jnp.array([8, 5], jnp.int32)

    params = init_params(key, D, config.lstm_hidden_size, config.nlayers)

    # Tight semantic check in full f32 (kernel vs pure-JAX reference).
    out32, (h32, c32) = bilstm_forward(src, src_lengths, params, config,
                                       compute_dtype=jnp.float32)
    jax.block_until_ready((out32, h32, c32))
    r32, (rh32, rc32) = bilstm_ref(src, src_lengths, params, config,
                                   compute_dtype=jnp.float32)
    np.testing.assert_allclose(np.asarray(out32), np.asarray(r32), rtol=1e-3, atol=1e-3)
    np.testing.assert_allclose(np.asarray(h32), np.asarray(rh32), rtol=1e-3, atol=1e-3)
    np.testing.assert_allclose(np.asarray(c32), np.asarray(rc32), rtol=1e-3, atol=1e-3)

    # Production path: bf16 gate streams & matmul operands, f32 accumulate/state.
    outputs, (h_t, c_t) = bilstm_forward(src, src_lengths, params, config)
    jax.block_until_ready((outputs, h_t, c_t))
    r16, (rh16, rc16) = bilstm_ref(src, src_lengths, params, config)
    np.testing.assert_allclose(np.asarray(outputs), np.asarray(r16), rtol=2e-2, atol=2e-2)
    np.testing.assert_allclose(np.asarray(h_t), np.asarray(rh16), rtol=2e-2, atol=2e-2)
    np.testing.assert_allclose(np.asarray(c_t), np.asarray(rc16), rtol=2e-2, atol=2e-2)

    print("KERNEL_OK")
</pallas_src>

<mosaic_0001>
module attributes {stable_mosaic.version = 11 : i64} {
  func.func @_bilstm_recurrent_kernel(%arg0: i32, %arg1: memref<8x8x128xf32, #tpu.memory_space<vmem>>, %arg2: memref<8x8x128xf32, #tpu.memory_space<vmem>>, %arg3: memref<8x1xi32, #tpu.memory_space<vmem>>, %arg4: memref<64x256xf32, #tpu.memory_space<vmem>>, %arg5: memref<8x8x32xf32, #tpu.memory_space<vmem>>, %arg6: memref<8x8x32xf32, #tpu.memory_space<vmem>>, %arg7: memref<8x32xf32, #tpu.memory_space<vmem>>, %arg8: memref<8x32xf32, #tpu.memory_space<vmem>>, %arg9: memref<8x32xf32, #tpu.memory_space<vmem>>, %arg10: memref<8x32xf32, #tpu.memory_space<vmem>>, %arg11: memref<8x32xf32, #tpu.memory_space<vmem>>, %arg12: memref<8x32xf32, #tpu.memory_space<vmem>>, %arg13: memref<8x32xf32, #tpu.memory_space<vmem>>, %arg14: memref<8x32xf32, #tpu.memory_space<vmem>>) attributes {dimension_semantics = [#tpu.dimension_semantics<arbitrary>], iteration_bounds = array<i64: 1>, scalar_prefetch = 0 : i64, scratch_operands = 4 : i64, tpu.core_type = #tpu.core_type<tc>, window_params = [{transform_indices = @transform_0, window_bounds = array<i64: 8, 8, 128>}, {transform_indices = @transform_1, window_bounds = array<i64: 8, 8, 128>}, {pipeline_mode = #tpu.pipeline_mode<synchronous>, transform_indices = @transform_2, window_bounds = array<i64: 8, 1>}, {pipeline_mode = #tpu.pipeline_mode<synchronous>, transform_indices = @transform_3, window_bounds = array<i64: 64, 256>}, {transform_indices = @transform_4, window_bounds = array<i64: 8, 8, 32>}, {transform_indices = @transform_5, window_bounds = array<i64: 8, 8, 32>}, {pipeline_mode = #tpu.pipeline_mode<synchronous>, transform_indices = @transform_6, window_bounds = array<i64: 8, 32>}, {pipeline_mode = #tpu.pipeline_mode<synchronous>, transform_indices = @transform_7, window_bounds = array<i64: 8, 32>}, {pipeline_mode = #tpu.pipeline_mode<synchronous>, transform_indices = @transform_8, window_bounds = array<i64: 8, 32>}, {pipeline_mode = #tpu.pipeline_mode<synchronous>, transform_indices = @transform_9, window_bounds = array<i64: 8, 32>}]} {
    %c0_i32 = arith.constant 0 : i32
    %0 = arith.cmpi eq, %arg0, %c0_i32 : i32
    %1 = arith.extui %0 : i1 to i32
    %c0_i32_0 = arith.constant 0 : i32
    %2 = arith.cmpi ne, %1, %c0_i32_0 : i32
    scf.if %2 {
      %cst_168 = arith.constant 0.000000e+00 : f32
      %787 = vector.broadcast %cst_168 : f32 to vector<8x32xf32>
      %c0_169 = arith.constant 0 : index
      %c0_170 = arith.constant 0 : index
      %788 = vector.load %arg11[%c0_169, %c0_170] : memref<8x32xf32, #tpu.memory_space<vmem>>, vector<8x32xf32>
      tpu.vector_store %arg11[%c0_169, %c0_170], %787 {strides = array<i32>} : memref<8x32xf32, #tpu.memory_space<vmem>>, vector<8x32xf32>,
      %cst_171 = arith.constant 0.000000e+00 : f32
      %789 = vector.broadcast %cst_171 : f32 to vector<8x32xf32>
      %c0_172 = arith.constant 0 : index
      %c0_173 = arith.constant 0 : index
      %790 = vector.load %arg12[%c0_172, %c0_173] : memref<8x32xf32, #tpu.memory_space<vmem>>, vector<8x32xf32>
      tpu.vector_store %arg12[%c0_172, %c0_173], %789 {strides = array<i32>} : memref<8x32xf32, #tpu.memory_space<vmem>>, vector<8x32xf32>,
      %cst_174 = arith.constant 0.000000e+00 : f32
      %791 = vector.broadcast %cst_174 : f32 to vector<8x32xf32>
      %c0_175 = arith.constant 0 : index
      %c0_176 = arith.constant 0 : index
      %792 = vector.load %arg13[%c0_175, %c0_176] : memref<8x32xf32, #tpu.memory_space<vmem>>, vector<8x32xf32>
      tpu.vector_store %arg13[%c0_175, %c0_176], %791 {strides = array<i32>} : memref<8x32xf32, #tpu.memory_space<vmem>>, vector<8x32xf32>,
      %cst_177 = arith.constant 0.000000e+00 : f32
      %793 = vector.broadcast %cst_177 : f32 to vector<8x32xf32>
      %c0_178 = arith.constant 0 : index
      %c0_179 = arith.constant 0 : index
      %794 = vector.load %arg14[%c0_178, %c0_179] : memref<8x32xf32, #tpu.memory_space<vmem>>, vector<8x32xf32>
      tpu.vector_store %arg14[%c0_178, %c0_179], %793 {strides = array<i32>} : memref<8x32xf32, #tpu.memory_space<vmem>>, vector<8x32xf32>,
    } else {
    }
    %c0 = arith.constant 0 : index
    %c0_1 = arith.constant 0 : index
    %3 = vector.load %arg3[%c0, %c0_1] : memref<8x1xi32, #tpu.memory_space<vmem>>, vector<8x1xi32>
    %cst = arith.constant -1.000000e+00 : f32
    %4 = vector.broadcast %cst : f32 to vector<8x32xf32>
    %c8_i32 = arith.constant 8 : i32
    %5 = arith.muli %arg0, %c8_i32 : i32
    %c0_i32_2 = arith.constant 0 : i32
    %6 = arith.subi %c0_i32_2, %arg0 : i32
    %c8_i32_3 = arith.constant 8 : i32
    %7 = arith.muli %6, %c8_i32_3 : i32
    %c0_4 = arith.constant 0 : index
    %c0_5 = arith.constant 0 : index
    %8 = vector.load %arg11[%c0_4, %c0_5] : memref<8x32xf32, #tpu.memory_space<vmem>>, vector<8x32xf32>
    %c0_6 = arith.constant 0 : index
    %c0_7 = arith.constant 0 : index
    %9 = vector.load %arg12[%c0_6, %c0_7] : memref<8x32xf32, #tpu.memory_space<vmem>>, vector<8x32xf32>
    %c0_8 = arith.constant 0 : index
    %c0_9 = arith.constant 0 : index
    %10 = vector.load %arg13[%c0_8, %c0_9] : memref<8x32xf32, #tpu.memory_space<vmem>>, vector<8x32xf32>
    %c0_10 = arith.constant 0 : index
    %c0_11 = arith.constant 0 : index
    %11 = vector.load %arg14[%c0_10, %c0_11] : memref<8x32xf32, #tpu.memory_space<vmem>>, vector<8x32xf32>
    %c0_i32_12 = arith.constant 0 : i32
    %12 = tpu.concatenate %8, %10 in 1 : vector<8x32xf32>, vector<8x32xf32> -> vector<8x64xf32>
    %c0_13 = arith.constant 0 : index
    %c0_14 = arith.constant 0 : index
    %13 = vector.load %arg4[%c0_13, %c0_14] : memref<64x256xf32, #tpu.memory_space<vmem>>, vector<64x256xf32>
    %cst_15 = arith.constant dense<0.000000e+00> : vector<8x256xf32>
    %14 = tpu.matmul %12, %13, %cst_15 {dimension_numbers = #tpu.dot_dimension_numbers<[1], [0], [0], [1], [0, 0, 1, 1], [], []>} : vector<8x64xf32>, vector<64x256xf32>, vector<8x256xf32> -> vector<8x256xf32>
    %15 = vector.extract_strided_slice %14 {offsets = [0, 0], sizes = [8, 128], strides = [1, 1]} : vector<8x256xf32> to vector<8x128xf32>
    %16 = vector.extract_strided_slice %14 {offsets = [0, 128], sizes = [8, 128], strides = [1, 1]} : vector<8x256xf32> to vector<8x128xf32>
    %c7_i32 = arith.constant 7 : i32
    %17 = arith.subi %c7_i32, %c0_i32_12 : i32
    %18 = arith.index_cast %c0_i32_12 : i32 to index
    %c0_16 = arith.constant 0 : index
    %c0_17 = arith.constant 0 : index
    %19 = vector.load %arg1[%18, %c0_16, %c0_17] : memref<8x8x128xf32, #tpu.memory_space<vmem>>, vector<1x8x128xf32>
    %20 = vector.shape_cast %19 : vector<1x8x128xf32> to vector<8x128xf32>
    %21 = arith.addf %20, %15 : vector<8x128xf32>
    %22 = arith.index_cast %17 : i32 to index
    %c0_18 = arith.constant 0 : index
    %c0_19 = arith.constant 0 : index
    %23 = vector.load %arg2[%22, %c0_18, %c0_19] : memref<8x8x128xf32, #tpu.memory_space<vmem>>, vector<1x8x128xf32>
    %24 = vector.shape_cast %23 : vector<1x8x128xf32> to vector<8x128xf32>
    %25 = arith.addf %24, %16 : vector<8x128xf32>
    %26 = arith.addi %5, %c0_i32_12 : i32
    %27 = vector.broadcast %26 : i32 to vector<8x1xi32>
    %28 = arith.cmpi slt, %27, %3 : vector<8x1xi32>
    %29 = arith.addi %7, %17 : i32
    %30 = vector.broadcast %29 : i32 to vector<8x1xi32>
    %31 = arith.cmpi slt, %30, %3 : vector<8x1xi32>
    %32 = vector.extract_strided_slice %21 {offsets = [0, 0], sizes = [8, 32], strides = [1, 1]} : vector<8x128xf32> to vector<8x32xf32>
    %33 = arith.negf %32 : vector<8x32xf32>
    %34 = math.exp %33 : vector<8x32xf32>
    %cst_20 = arith.constant 1.000000e+00 : f32
    %35 = vector.broadcast %cst_20 : f32 to vector<8x32xf32>
    %36 = arith.addf %35, %34 : vector<8x32xf32>
    %37 = arith.divf %35, %36 : vector<8x32xf32>
    %38 = vector.extract_strided_slice %21 {offsets = [0, 32], sizes = [8, 32], strides = [1, 1]} : vector<8x128xf32> to vector<8x32xf32>
    %39 = arith.negf %38 : vector<8x32xf32>
    %40 = math.exp %39 : vector<8x32xf32>
    %cst_21 = arith.constant 1.000000e+00 : f32
    %41 = vector.broadcast %cst_21 : f32 to vector<8x32xf32>
    %42 = arith.addf %41, %40 : vector<8x32xf32>
    %43 = arith.divf %41, %42 : vector<8x32xf32>
    %44 = vector.extract_strided_slice %21 {offsets = [0, 64], sizes = [8, 32], strides = [1, 1]} : vector<8x128xf32> to vector<8x32xf32>
    %45 = math.tanh %44 : vector<8x32xf32>
    %46 = vector.extract_strided_slice %21 {offsets = [0, 96], sizes = [8, 32], strides = [1, 1]} : vector<8x128xf32> to vector<8x32xf32>
    %47 = arith.negf %46 : vector<8x32xf32>
    %48 = math.exp %47 : vector<8x32xf32>
    %cst_22 = arith.constant 1.000000e+00 : f32
    %49 = vector.broadcast %cst_22 : f32 to vector<8x32xf32>
    %50 = arith.addf %49, %48 : vector<8x32xf32>
    %51 = arith.divf %49, %50 : vector<8x32xf32>
    %52 = arith.mulf %43, %9 : vector<8x32xf32>
    %53 = arith.mulf %37, %45 : vector<8x32xf32>
    %54 = arith.addf %52, %53 : vector<8x32xf32>
    %55 = math.tanh %54 : vector<8x32xf32>
    %56 = arith.mulf %51, %55 : vector<8x32xf32>
    %57 = vector.extract_strided_slice %25 {offsets = [0, 0], sizes = [8, 32], strides = [1, 1]} : vector<8x128xf32> to vector<8x32xf32>
    %58 = arith.negf %57 : vector<8x32xf32>
    %59 = math.exp %58 : vector<8x32xf32>
    %cst_23 = arith.constant 1.000000e+00 : f32
    %60 = vector.broadcast %cst_23 : f32 to vector<8x32xf32>
    %61 = arith.addf %60, %59 : vector<8x32xf32>
    %62 = arith.divf %60, %61 : vector<8x32xf32>
    %63 = vector.extract_strided_slice %25 {offsets = [0, 32], sizes = [8, 32], strides = [1, 1]} : vector<8x128xf32> to vector<8x32xf32>
    %64 = arith.negf %63 : vector<8x32xf32>
    %65 = math.exp %64 : vector<8x32xf32>
    %cst_24 = arith.constant 1.000000e+00 : f32
    %66 = vector.broadcast %cst_24 : f32 to vector<8x32xf32>
    %67 = arith.addf %66, %65 : vector<8x32xf32>
    %68 = arith.divf %66, %67 : vector<8x32xf32>
    %69 = vector.extract_strided_slice %25 {offsets = [0, 64], sizes = [8, 32], strides = [1, 1]} : vector<8x128xf32> to vector<8x32xf32>
    %70 = math.tanh %69 : vector<8x32xf32>
    %71 = vector.extract_strided_slice %25 {offsets = [0, 96], sizes = [8, 32], strides = [1, 1]} : vector<8x128xf32> to vector<8x32xf32>
    %72 = arith.negf %71 : vector<8x32xf32>
    %73 = math.exp %72 : vector<8x32xf32>
    %cst_25 = arith.constant 1.000000e+00 : f32
    %74 = vector.broadcast %cst_25 : f32 to vector<8x32xf32>
    %75 = arith.addf %74, %73 : vector<8x32xf32>
    %76 = arith.divf %74, %75 : vector<8x32xf32>
    %77 = arith.mulf %68, %11 : vector<8x32xf32>
    %78 = arith.mulf %62, %70 : vector<8x32xf32>
    %79 = arith.addf %77, %78 : vector<8x32xf32>
    %80 = math.tanh %79 : vector<8x32xf32>
    %81 = arith.mulf %76, %80 : vector<8x32xf32>
    %82 = vector.shape_cast %28 : vector<8x1xi1> to vector<8x1xi1>
    %83 = vector.broadcast %82 : vector<8x1xi1> to vector<8x32xi1>
    %84 = arith.select %83, %56, %4 : vector<8x32xi1>, vector<8x32xf32>
    %85 = arith.index_cast %c0_i32_12 : i32 to index
    %c0_26 = arith.constant 0 : index
    %c0_27 = arith.constant 0 : index
    %86 = vector.load %arg5[%85, %c0_26, %c0_27] : memref<8x8x32xf32, #tpu.memory_space<vmem>>, vector<1x8x32xf32>
    %87 = vector.shape_cast %86 : vector<1x8x32xf32> to vector<8x32xf32>
    %88 = vector.shape_cast %84 : vector<8x32xf32> to vector<1x8x32xf32>
    tpu.vector_store %arg5[%85, %c0_26, %c0_27], %88 {strides = array<i32>} : memref<8x8x32xf32, #tpu.memory_space<vmem>>, vector<1x8x32xf32>,
    %89 = vector.shape_cast %31 : vector<8x1xi1> to vector<8x1xi1>
    %90 = vector.broadcast %89 : vector<8x1xi1> to vector<8x32xi1>
    %91 = arith.select %90, %81, %4 : vector<8x32xi1>, vector<8x32xf32>
    %92 = arith.index_cast %17 : i32 to index
    %c0_28 = arith.constant 0 : index
    %c0_29 = arith.constant 0 : index
    %93 = vector.load %arg6[%92, %c0_28, %c0_29] : memref<8x8x32xf32, #tpu.memory_space<vmem>>, vector<1x8x32xf32>
    %94 = vector.shape_cast %93 : vector<1x8x32xf32> to vector<8x32xf32>
    %95 = vector.shape_cast %91 : vector<8x32xf32> to vector<1x8x32xf32>
    tpu.vector_store %arg6[%92, %c0_28, %c0_29], %95 {strides = array<i32>} : memref<8x8x32xf32, #tpu.memory_space<vmem>>, vector<1x8x32xf32>,
    %96 = vector.shape_cast %28 : vector<8x1xi1> to vector<8x1xi1>
    %97 = vector.broadcast %96 : vector<8x1xi1> to vector<8x32xi1>
    %98 = arith.select %97, %56, %8 : vector<8x32xi1>, vector<8x32xf32>
    %99 = vector.shape_cast %28 : vector<8x1xi1> to vector<8x1xi1>
    %100 = vector.broadcast %99 : vector<8x1xi1> to vector<8x32xi1>
    %101 = arith.select %100, %54, %9 : vector<8x32xi1>, vector<8x32xf32>
    %102 = vector.shape_cast %31 : vector<8x1xi1> to vector<8x1xi1>
    %103 = vector.broadcast %102 : vector<8x1xi1> to vector<8x32xi1>
    %104 = arith.select %103, %81, %10 : vector<8x32xi1>, vector<8x32xf32>
    %105 = vector.shape_cast %31 : vector<8x1xi1> to vector<8x1xi1>
    %106 = vector.broadcast %105 : vector<8x1xi1> to vector<8x32xi1>
    %107 = arith.select %106, %79, %11 : vector<8x32xi1>, vector<8x32xf32>
    %c1_i32 = arith.constant 1 : i32
    %108 = tpu.concatenate %98, %104 in 1 : vector<8x32xf32>, vector<8x32xf32> -> vector<8x64xf32>
    %c0_30 = arith.constant 0 : index
    %c0_31 = arith.constant 0 : index
    %109 = vector.load %arg4[%c0_30, %c0_31] : memref<64x256xf32, #tpu.memory_space<vmem>>, vector<64x256xf32>
    %cst_32 = arith.constant dense<0.000000e+00> : vector<8x256xf32>
    %110 = tpu.matmul %108, %109, %cst_32 {dimension_numbers = #tpu.dot_dimension_numbers<[1], [0], [0], [1], [0, 0, 1, 1], [], []>} : vector<8x64xf32>, vector<64x256xf32>, vector<8x256xf32> -> vector<8x256xf32>
    %111 = vector.extract_strided_slice %110 {offsets = [0, 0], sizes = [8, 128], strides = [1, 1]} : vector<8x256xf32> to vector<8x128xf32>
    %112 = vector.extract_strided_slice %110 {offsets = [0, 128], sizes = [8, 128], strides = [1, 1]} : vector<8x256xf32> to vector<8x128xf32>
    %c7_i32_33 = arith.constant 7 : i32
    %113 = arith.subi %c7_i32_33, %c1_i32 : i32
    %114 = arith.index_cast %c1_i32 : i32 to index
    %c0_34 = arith.constant 0 : index
    %c0_35 = arith.constant 0 : index
    %115 = vector.load %arg1[%114, %c0_34, %c0_35] : memref<8x8x128xf32, #tpu.memory_space<vmem>>, vector<1x8x128xf32>
    %116 = vector.shape_cast %115 : vector<1x8x128xf32> to vector<8x128xf32>
    %117 = arith.addf %116, %111 : vector<8x128xf32>
    %118 = arith.index_cast %113 : i32 to index
    %c0_36 = arith.constant 0 : index
    %c0_37 = arith.constant 0 : index
    %119 = vector.load %arg2[%118, %c0_36, %c0_37] : memref<8x8x128xf32, #tpu.memory_space<vmem>>, vector<1x8x128xf32>
    %120 = vector.shape_cast %119 : vector<1x8x128xf32> to vector<8x128xf32>
    %121 = arith.addf %120, %112 : vector<8x128xf32>
    %122 = arith.addi %5, %c1_i32 : i32
    %123 = vector.broadcast %122 : i32 to vector<8x1xi32>
    %124 = arith.cmpi slt, %123, %3 : vector<8x1xi32>
    %125 = arith.addi %7, %113 : i32
    %126 = vector.broadcast %125 : i32 to vector<8x1xi32>
    %127 = arith.cmpi slt, %126, %3 : vector<8x1xi32>
    %128 = vector.extract_strided_slice %117 {offsets = [0, 0], sizes = [8, 32], strides = [1, 1]} : vector<8x128xf32> to vector<8x32xf32>
    %129 = arith.negf %128 : vector<8x32xf32>
    %130 = math.exp %129 : vector<8x32xf32>
    %cst_38 = arith.constant 1.000000e+00 : f32
    %131 = vector.broadcast %cst_38 : f32 to vector<8x32xf32>
    %132 = arith.addf %131, %130 : vector<8x32xf32>
    %133 = arith.divf %131, %132 : vector<8x32xf32>
    %134 = vector.extract_strided_slice %117 {offsets = [0, 32], sizes = [8, 32], strides = [1, 1]} : vector<8x128xf32> to vector<8x32xf32>
    %135 = arith.negf %134 : vector<8x32xf32>
    %136 = math.exp %135 : vector<8x32xf32>
    %cst_39 = arith.constant 1.000000e+00 : f32
    %137 = vector.broadcast %cst_39 : f32 to vector<8x32xf32>
    %138 = arith.addf %137, %136 : vector<8x32xf32>
    %139 = arith.divf %137, %138 : vector<8x32xf32>
    %140 = vector.extract_strided_slice %117 {offsets = [0, 64], sizes = [8, 32], strides = [1, 1]} : vector<8x128xf32> to vector<8x32xf32>
    %141 = math.tanh %140 : vector<8x32xf32>
    %142 = vector.extract_strided_slice %117 {offsets = [0, 96], sizes = [8, 32], strides = [1, 1]} : vector<8x128xf32> to vector<8x32xf32>
    %143 = arith.negf %142 : vector<8x32xf32>
    %144 = math.exp %143 : vector<8x32xf32>
    %cst_40 = arith.constant 1.000000e+00 : f32
    %145 = vector.broadcast %cst_40 : f32 to vector<8x32xf32>
    %146 = arith.addf %145, %144 : vector<8x32xf32>
    %147 = arith.divf %145, %146 : vector<8x32xf32>
    %148 = arith.mulf %139, %101 : vector<8x32xf32>
    %149 = arith.mulf %133, %141 : vector<8x32xf32>
    %150 = arith.addf %148, %149 : vector<8x32xf32>
    %151 = math.tanh %150 : vector<8x32xf32>
    %152 = arith.mulf %147, %151 : vector<8x32xf32>
    %153 = vector.extract_strided_slice %121 {offsets = [0, 0], sizes = [8, 32], strides = [1, 1]} : vector<8x128xf32> to vector<8x32xf32>
    %154 = arith.negf %153 : vector<8x32xf32>
    %155 = math.exp %154 : vector<8x32xf32>
    %cst_41 = arith.constant 1.000000e+00 : f32
    %156 = vector.broadcast %cst_41 : f32 to vector<8x32xf32>
    %157 = arith.addf %156, %155 : vector<8x32xf32>
    %158 = arith.divf %156, %157 : vector<8x32xf32>
    %159 = vector.extract_strided_slice %121 {offsets = [0, 32], sizes = [8, 32], strides = [1, 1]} : vector<8x128xf32> to vector<8x32xf32>
    %160 = arith.negf %159 : vector<8x32xf32>
    %161 = math.exp %160 : vector<8x32xf32>
    %cst_42 = arith.constant 1.000000e+00 : f32
    %162 = vector.broadcast %cst_42 : f32 to vector<8x32xf32>
    %163 = arith.addf %162, %161 : vector<8x32xf32>
    %164 = arith.divf %162, %163 : vector<8x32xf32>
    %165 = vector.extract_strided_slice %121 {offsets = [0, 64], sizes = [8, 32], strides = [1, 1]} : vector<8x128xf32> to vector<8x32xf32>
    %166 = math.tanh %165 : vector<8x32xf32>
    %167 = vector.extract_strided_slice %121 {offsets = [0, 96], sizes = [8, 32], strides = [1, 1]} : vector<8x128xf32> to vector<8x32xf32>
    %168 = arith.negf %167 : vector<8x32xf32>
    %169 = math.exp %168 : vector<8x32xf32>
    %cst_43 = arith.constant 1.000000e+00 : f32
    %170 = vector.broadcast %cst_43 : f32 to vector<8x32xf32>
    %171 = arith.addf %170, %169 : vector<8x32xf32>
    %172 = arith.divf %170, %171 : vector<8x32xf32>
    %173 = arith.mulf %164, %107 : vector<8x32xf32>
    %174 = arith.mulf %158, %166 : vector<8x32xf32>
    %175 = arith.addf %173, %174 : vector<8x32xf32>
    %176 = math.tanh %175 : vector<8x32xf32>
    %177 = arith.mulf %172, %176 : vector<8x32xf32>
    %178 = vector.shape_cast %124 : vector<8x1xi1> to vector<8x1xi1>
    %179 = vector.broadcast %178 : vector<8x1xi1> to vector<8x32xi1>
    %180 = arith.select %179, %152, %4 : vector<8x32xi1>, vector<8x32xf32>
    %181 = arith.index_cast %c1_i32 : i32 to index
    %c0_44 = arith.constant 0 : index
    %c0_45 = arith.constant 0 : index
    %182 = vector.load %arg5[%181, %c0_44, %c0_45] : memref<8x8x32xf32, #tpu.memory_space<vmem>>, vector<1x8x32xf32>
    %183 = vector.shape_cast %182 : vector<1x8x32xf32> to vector<8x32xf32>
    %184 = vector.shape_cast %180 : vector<8x32xf32> to vector<1x8x32xf32>
    tpu.vector_store %arg5[%181, %c0_44, %c0_45], %184 {strides = array<i32>} : memref<8x8x32xf32, #tpu.memory_space<vmem>>, vector<1x8x32xf32>,
    %185 = vector.shape_cast %127 : vector<8x1xi1> to vector<8x1xi1>
    %186 = vector.broadcast %185 : vector<8x1xi1> to vector<8x32xi1>
    %187 = arith.select %186, %177, %4 : vector<8x32xi1>, vector<8x32xf32>
    %188 = arith.index_cast %113 : i32 to index
    %c0_46 = arith.constant 0 : index
    %c0_47 = arith.constant 0 : index
    %189 = vector.load %arg6[%188, %c0_46, %c0_47] : memref<8x8x32xf32, #tpu.memory_space<vmem>>, vector<1x8x32xf32>
    %190 = vector.shape_cast %189 : vector<1x8x32xf32> to vector<8x32xf32>
    %191 = vector.shape_cast %187 : vector<8x32xf32> to vector<1x8x32xf32>
    tpu.vector_store %arg6[%188, %c0_46, %c0_47], %191 {strides = array<i32>} : memref<8x8x32xf32, #tpu.memory_space<vmem>>, vector<1x8x32xf32>,
    %192 = vector.shape_cast %124 : vector<8x1xi1> to vector<8x1xi1>
    %193 = vector.broadcast %192 : vector<8x1xi1> to vector<8x32xi1>
    %194 = arith.select %193, %152, %98 : vector<8x32xi1>, vector<8x32xf32>
    %195 = vector.shape_cast %124 : vector<8x1xi1> to vector<8x1xi1>
    %196 = vector.broadcast %195 : vector<8x1xi1> to vector<8x32xi1>
    %197 = arith.select %196, %150, %101 : vector<8x32xi1>, vector<8x32xf32>
    %198 = vector.shape_cast %127 : vector<8x1xi1> to vector<8x1xi1>
    %199 = vector.broadcast %198 : vector<8x1xi1> to vector<8x32xi1>
    %200 = arith.select %199, %177, %104 : vector<8x32xi1>, vector<8x32xf32>
    %201 = vector.shape_cast %127 : vector<8x1xi1> to vector<8x1xi1>
    %202 = vector.broadcast %201 : vector<8x1xi1> to vector<8x32xi1>
    %203 = arith.select %202, %175, %107 : vector<8x32xi1>, vector<8x32xf32>
    %c2_i32 = arith.constant 2 : i32
    %204 = tpu.concatenate %194, %200 in 1 : vector<8x32xf32>, vector<8x32xf32> -> vector<8x64xf32>
    %c0_48 = arith.constant 0 : index
    %c0_49 = arith.constant 0 : index
    %205 = vector.load %arg4[%c0_48, %c0_49] : memref<64x256xf32, #tpu.memory_space<vmem>>, vector<64x256xf32>
    %cst_50 = arith.constant dense<0.000000e+00> : vector<8x256xf32>
    %206 = tpu.matmul %204, %205, %cst_50 {dimension_numbers = #tpu.dot_dimension_numbers<[1], [0], [0], [1], [0, 0, 1, 1], [], []>} : vector<8x64xf32>, vector<64x256xf32>, vector<8x256xf32> -> vector<8x256xf32>
    %207 = vector.extract_strided_slice %206 {offsets = [0, 0], sizes = [8, 128], strides = [1, 1]} : vector<8x256xf32> to vector<8x128xf32>
    %208 = vector.extract_strided_slice %206 {offsets = [0, 128], sizes = [8, 128], strides = [1, 1]} : vector<8x256xf32> to vector<8x128xf32>
    %c7_i32_51 = arith.constant 7 : i32
    %209 = arith.subi %c7_i32_51, %c2_i32 : i32
    %210 = arith.index_cast %c2_i32 : i32 to index
    %c0_52 = arith.constant 0 : index
    %c0_53 = arith.constant 0 : index
    %211 = vector.load %arg1[%210, %c0_52, %c0_53] : memref<8x8x128xf32, #tpu.memory_space<vmem>>, vector<1x8x128xf32>
    %212 = vector.shape_cast %211 : vector<1x8x128xf32> to vector<8x128xf32>
    %213 = arith.addf %212, %207 : vector<8x128xf32>
    %214 = arith.index_cast %209 : i32 to index
    %c0_54 = arith.constant 0 : index
    %c0_55 = arith.constant 0 : index
    %215 = vector.load %arg2[%214, %c0_54, %c0_55] : memref<8x8x128xf32, #tpu.memory_space<vmem>>, vector<1x8x128xf32>
    %216 = vector.shape_cast %215 : vector<1x8x128xf32> to vector<8x128xf32>
    %217 = arith.addf %216, %208 : vector<8x128xf32>
    %218 = arith.addi %5, %c2_i32 : i32
    %219 = vector.broadcast %218 : i32 to vector<8x1xi32>
    %220 = arith.cmpi slt, %219, %3 : vector<8x1xi32>
    %221 = arith.addi %7, %209 : i32
    %222 = vector.broadcast %221 : i32 to vector<8x1xi32>
    %223 = arith.cmpi slt, %222, %3 : vector<8x1xi32>
    %224 = vector.extract_strided_slice %213 {offsets = [0, 0], sizes = [8, 32], strides = [1, 1]} : vector<8x128xf32> to vector<8x32xf32>
    %225 = arith.negf %224 : vector<8x32xf32>
    %226 = math.exp %225 : vector<8x32xf32>
    %cst_56 = arith.constant 1.000000e+00 : f32
    %227 = vector.broadcast %cst_56 : f32 to vector<8x32xf32>
    %228 = arith.addf %227, %226 : vector<8x32xf32>
    %229 = arith.divf %227, %228 : vector<8x32xf32>
    %230 = vector.extract_strided_slice %213 {offsets = [0, 32], sizes = [8, 32], strides = [1, 1]} : vector<8x128xf32> to vector<8x32xf32>
    %231 = arith.negf %230 : vector<8x32xf32>
    %232 = math.exp %231 : vector<8x32xf32>
    %cst_57 = arith.constant 1.000000e+00 : f32
    %233 = vector.broadcast %cst_57 : f32 to vector<8x32xf32>
    %234 = arith.addf %233, %232 : vector<8x32xf32>
    %235 = arith.divf %233, %234 : vector<8x32xf32>
    %236 = vector.extract_strided_slice %213 {offsets = [0, 64], sizes = [8, 32], strides = [1, 1]} : vector<8x128xf32> to vector<8x32xf32>
    %237 = math.tanh %236 : vector<8x32xf32>
    %238 = vector.extract_strided_slice %213 {offsets = [0, 96], sizes = [8, 32], strides = [1, 1]} : vector<8x128xf32> to vector<8x32xf32>
    %239 = arith.negf %238 : vector<8x32xf32>
    %240 = math.exp %239 : vector<8x32xf32>
    %cst_58 = arith.constant 1.000000e+00 : f32
    %241 = vector.broadcast %cst_58 : f32 to vector<8x32xf32>
    %242 = arith.addf %241, %240 : vector<8x32xf32>
    %243 = arith.divf %241, %242 : vector<8x32xf32>
    %244 = arith.mulf %235, %197 : vector<8x32xf32>
    %245 = arith.mulf %229, %237 : vector<8x32xf32>
    %246 = arith.addf %244, %245 : vector<8x32xf32>
    %247 = math.tanh %246 : vector<8x32xf32>
    %248 = arith.mulf %243, %247 : vector<8x32xf32>
    %249 = vector.extract_strided_slice %217 {offsets = [0, 0], sizes = [8, 32], strides = [1, 1]} : vector<8x128xf32> to vector<8x32xf32>
    %250 = arith.negf %249 : vector<8x32xf32>
    %251 = math.exp %250 : vector<8x32xf32>
    %cst_59 = arith.constant 1.000000e+00 : f32
    %252 = vector.broadcast %cst_59 : f32 to vector<8x32xf32>
    %253 = arith.addf %252, %251 : vector<8x32xf32>
    %254 = arith.divf %252, %253 : vector<8x32xf32>
    %255 = vector.extract_strided_slice %217 {offsets = [0, 32], sizes = [8, 32], strides = [1, 1]} : vector<8x128xf32> to vector<8x32xf32>
    %256 = arith.negf %255 : vector<8x32xf32>
    %257 = math.exp %256 : vector<8x32xf32>
    %cst_60 = arith.constant 1.000000e+00 : f32
    %258 = vector.broadcast %cst_60 : f32 to vector<8x32xf32>
    %259 = arith.addf %258, %257 : vector<8x32xf32>
    %260 = arith.divf %258, %259 : vector<8x32xf32>
    %261 = vector.extract_strided_slice %217 {offsets = [0, 64], sizes = [8, 32], strides = [1, 1]} : vector<8x128xf32> to vector<8x32xf32>
    %262 = math.tanh %261 : vector<8x32xf32>
    %263 = vector.extract_strided_slice %217 {offsets = [0, 96], sizes = [8, 32], strides = [1, 1]} : vector<8x128xf32> to vector<8x32xf32>
    %264 = arith.negf %263 : vector<8x32xf32>
    %265 = math.exp %264 : vector<8x32xf32>
    %cst_61 = arith.constant 1.000000e+00 : f32
    %266 = vector.broadcast %cst_61 : f32 to vector<8x32xf32>
    %267 = arith.addf %266, %265 : vector<8x32xf32>
    %268 = arith.divf %266, %267 : vector<8x32xf32>
    %269 = arith.mulf %260, %203 : vector<8x32xf32>
    %270 = arith.mulf %254, %262 : vector<8x32xf32>
    %271 = arith.addf %269, %270 : vector<8x32xf32>
    %272 = math.tanh %271 : vector<8x32xf32>
    %273 = arith.mulf %268, %272 : vector<8x32xf32>
    %274 = vector.shape_cast %220 : vector<8x1xi1> to vector<8x1xi1>
    %275 = vector.broadcast %274 : vector<8x1xi1> to vector<8x32xi1>
    %276 = arith.select %275, %248, %4 : vector<8x32xi1>, vector<8x32xf32>
    %277 = arith.index_cast %c2_i32 : i32 to index
    %c0_62 = arith.constant 0 : index
    %c0_63 = arith.constant 0 : index
    %278 = vector.load %arg5[%277, %c0_62, %c0_63] : memref<8x8x32xf32, #tpu.memory_space<vmem>>, vector<1x8x32xf32>
    %279 = vector.shape_cast %278 : vector<1x8x32xf32> to vector<8x32xf32>
    %280 = vector.shape_cast %276 : vector<8x32xf32> to vector<1x8x32xf32>
    tpu.vector_store %arg5[%277, %c0_62, %c0_63], %280 {strides = array<i32>} : memref<8x8x32xf32, #tpu.memory_space<vmem>>, vector<1x8x32xf32>,
    %281 = vector.shape_cast %223 : vector<8x1xi1> to vector<8x1xi1>
    %282 = vector.broadcast %281 : vector<8x1xi1> to vector<8x32xi1>
    %283 = arith.select %282, %273, %4 : vector<8x32xi1>, vector<8x32xf32>
    %284 = arith.index_cast %209 : i32 to index
    %c0_64 = arith.constant 0 : index
    %c0_65 = arith.constant 0 : index
    %285 = vector.load %arg6[%284, %c0_64, %c0_65] : memref<8x8x32xf32, #tpu.memory_space<vmem>>, vector<1x8x32xf32>
    %286 = vector.shape_cast %285 : vector<1x8x32xf32> to vector<8x32xf32>
    %287 = vector.shape_cast %283 : vector<8x32xf32> to vector<1x8x32xf32>
    tpu.vector_store %arg6[%284, %c0_64, %c0_65], %287 {strides = array<i32>} : memref<8x8x32xf32, #tpu.memory_space<vmem>>, vector<1x8x32xf32>,
    %288 = vector.shape_cast %220 : vector<8x1xi1> to vector<8x1xi1>
    %289 = vector.broadcast %288 : vector<8x1xi1> to vector<8x32xi1>
    %290 = arith.select %289, %248, %194 : vector<8x32xi1>, vector<8x32xf32>
    %291 = vector.shape_cast %220 : vector<8x1xi1> to vector<8x1xi1>
    %292 = vector.broadcast %291 : vector<8x1xi1> to vector<8x32xi1>
    %293 = arith.select %292, %246, %197 : vector<8x32xi1>, vector<8x32xf32>
    %294 = vector.shape_cast %223 : vector<8x1xi1> to vector<8x1xi1>
    %295 = vector.broadcast %294 : vector<8x1xi1> to vector<8x32xi1>
    %296 = arith.select %295, %273, %200 : vector<8x32xi1>, vector<8x32xf32>
    %297 = vector.shape_cast %223 : vector<8x1xi1> to vector<8x1xi1>
    %298 = vector.broadcast %297 : vector<8x1xi1> to vector<8x32xi1>
    %299 = arith.select %298, %271, %203 : vector<8x32xi1>, vector<8x32xf32>
    %c3_i32 = arith.constant 3 : i32
    %300 = tpu.concatenate %290, %296 in 1 : vector<8x32xf32>, vector<8x32xf32> -> vector<8x64xf32>
    %c0_66 = arith.constant 0 : index
    %c0_67 = arith.constant 0 : index
    %301 = vector.load %arg4[%c0_66, %c0_67] : memref<64x256xf32, #tpu.memory_space<vmem>>, vector<64x256xf32>
    %cst_68 = arith.constant dense<0.000000e+00> : vector<8x256xf32>
    %302 = tpu.matmul %300, %301, %cst_68 {dimension_numbers = #tpu.dot_dimension_numbers<[1], [0], [0], [1], [0, 0, 1, 1], [], []>} : vector<8x64xf32>, vector<64x256xf32>, vector<8x256xf32> -> vector<8x256xf32>
    %303 = vector.extract_strided_slice %302 {offsets = [0, 0], sizes = [8, 128], strides = [1, 1]} : vector<8x256xf32> to vector<8x128xf32>
    %304 = vector.extract_strided_slice %302 {offsets = [0, 128], sizes = [8, 128], strides = [1, 1]} : vector<8x256xf32> to vector<8x128xf32>
    %c7_i32_69 = arith.constant 7 : i32
    %305 = arith.subi %c7_i32_69, %c3_i32 : i32
    %306 = arith.index_cast %c3_i32 : i32 to index
    %c0_70 = arith.constant 0 : index
    %c0_71 = arith.constant 0 : index
    %307 = vector.load %arg1[%306, %c0_70, %c0_71] : memref<8x8x128xf32, #tpu.memory_space<vmem>>, vector<1x8x128xf32>
    %308 = vector.shape_cast %307 : vector<1x8x128xf32> to vector<8x128xf32>
    %309 = arith.addf %308, %303 : vector<8x128xf32>
    %310 = arith.index_cast %305 : i32 to index
    %c0_72 = arith.constant 0 : index
    %c0_73 = arith.constant 0 : index
    %311 = vector.load %arg2[%310, %c0_72, %c0_73] : memref<8x8x128xf32, #tpu.memory_space<vmem>>, vector<1x8x128xf32>
    %312 = vector.shape_cast %311 : vector<1x8x128xf32> to vector<8x128xf32>
    %313 = arith.addf %312, %304 : vector<8x128xf32>
    %314 = arith.addi %5, %c3_i32 : i32
    %315 = vector.broadcast %314 : i32 to vector<8x1xi32>
    %316 = arith.cmpi slt, %315, %3 : vector<8x1xi32>
    %317 = arith.addi %7, %305 : i32
    %318 = vector.broadcast %317 : i32 to vector<8x1xi32>
    %319 = arith.cmpi slt, %318, %3 : vector<8x1xi32>
    %320 = vector.extract_strided_slice %309 {offsets = [0, 0], sizes = [8, 32], strides = [1, 1]} : vector<8x128xf32> to vector<8x32xf32>
    %321 = arith.negf %320 : vector<8x32xf32>
    %322 = math.exp %321 : vector<8x32xf32>
    %cst_74 = arith.constant 1.000000e+00 : f32
    %323 = vector.broadcast %cst_74 : f32 to vector<8x32xf32>
    %324 = arith.addf %323, %322 : vector<8x32xf32>
    %325 = arith.divf %323, %324 : vector<8x32xf32>
    %326 = vector.extract_strided_slice %309 {offsets = [0, 32], sizes = [8, 32], strides = [1, 1]} : vector<8x128xf32> to vector<8x32xf32>
    %327 = arith.negf %326 : vector<8x32xf32>
    %328 = math.exp %327 : vector<8x32xf32>
    %cst_75 = arith.constant 1.000000e+00 : f32
    %329 = vector.broadcast %cst_75 : f32 to vector<8x32xf32>
    %330 = arith.addf %329, %328 : vector<8x32xf32>
    %331 = arith.divf %329, %330 : vector<8x32xf32>
    %332 = vector.extract_strided_slice %309 {offsets = [0, 64], sizes = [8, 32], strides = [1, 1]} : vector<8x128xf32> to vector<8x32xf32>
    %333 = math.tanh %332 : vector<8x32xf32>
    %334 = vector.extract_strided_slice %309 {offsets = [0, 96], sizes = [8, 32], strides = [1, 1]} : vector<8x128xf32> to vector<8x32xf32>
    %335 = arith.negf %334 : vector<8x32xf32>
    %336 = math.exp %335 : vector<8x32xf32>
    %cst_76 = arith.constant 1.000000e+00 : f32
    %337 = vector.broadcast %cst_76 : f32 to vector<8x32xf32>
    %338 = arith.addf %337, %336 : vector<8x32xf32>
    %339 = arith.divf %337, %338 : vector<8x32xf32>
    %340 = arith.mulf %331, %293 : vector<8x32xf32>
    %341 = arith.mulf %325, %333 : vector<8x32xf32>
    %342 = arith.addf %340, %341 : vector<8x32xf32>
    %343 = math.tanh %342 : vector<8x32xf32>
    %344 = arith.mulf %339, %343 : vector<8x32xf32>
    %345 = vector.extract_strided_slice %313 {offsets = [0, 0], sizes = [8, 32], strides = [1, 1]} : vector<8x128xf32> to vector<8x32xf32>
    %346 = arith.negf %345 : vector<8x32xf32>
    %347 = math.exp %346 : vector<8x32xf32>
    %cst_77 = arith.constant 1.000000e+00 : f32
    %348 = vector.broadcast %cst_77 : f32 to vector<8x32xf32>
    %349 = arith.addf %348, %347 : vector<8x32xf32>
    %350 = arith.divf %348, %349 : vector<8x32xf32>
    %351 = vector.extract_strided_slice %313 {offsets = [0, 32], sizes = [8, 32], strides = [1, 1]} : vector<8x128xf32> to vector<8x32xf32>
    %352 = arith.negf %351 : vector<8x32xf32>
    %353 = math.exp %352 : vector<8x32xf32>
    %cst_78 = arith.constant 1.000000e+00 : f32
    %354 = vector.broadcast %cst_78 : f32 to vector<8x32xf32>
    %355 = arith.addf %354, %353 : vector<8x32xf32>
    %356 = arith.divf %354, %355 : vector<8x32xf32>
    %357 = vector.extract_strided_slice %313 {offsets = [0, 64], sizes = [8, 32], strides = [1, 1]} : vector<8x128xf32> to vector<8x32xf32>
    %358 = math.tanh %357 : vector<8x32xf32>
    %359 = vector.extract_strided_slice %313 {offsets = [0, 96], sizes = [8, 32], strides = [1, 1]} : vector<8x128xf32> to vector<8x32xf32>
    %360 = arith.negf %359 : vector<8x32xf32>
    %361 = math.exp %360 : vector<8x32xf32>
    %cst_79 = arith.constant 1.000000e+00 : f32
    %362 = vector.broadcast %cst_79 : f32 to vector<8x32xf32>
    %363 = arith.addf %362, %361 : vector<8x32xf32>
    %364 = arith.divf %362, %363 : vector<8x32xf32>
    %365 = arith.mulf %356, %299 : vector<8x32xf32>
    %366 = arith.mulf %350, %358 : vector<8x32xf32>
    %367 = arith.addf %365, %366 : vector<8x32xf32>
    %368 = math.tanh %367 : vector<8x32xf32>
    %369 = arith.mulf %364, %368 : vector<8x32xf32>
    %370 = vector.shape_cast %316 : vector<8x1xi1> to vector<8x1xi1>
    %371 = vector.broadcast %370 : vector<8x1xi1> to vector<8x32xi1>
    %372 = arith.select %371, %344, %4 : vector<8x32xi1>, vector<8x32xf32>
    %373 = arith.index_cast %c3_i32 : i32 to index
    %c0_80 = arith.constant 0 : index
    %c0_81 = arith.constant 0 : index
    %374 = vector.load %arg5[%373, %c0_80, %c0_81] : memref<8x8x32xf32, #tpu.memory_space<vmem>>, vector<1x8x32xf32>
    %375 = vector.shape_cast %374 : vector<1x8x32xf32> to vector<8x32xf32>
    %376 = vector.shape_cast %372 : vector<8x32xf32> to vector<1x8x32xf32>
    tpu.vector_store %arg5[%373, %c0_80, %c0_81], %376 {strides = array<i32>} : memref<8x8x32xf32, #tpu.memory_space<vmem>>, vector<1x8x32xf32>,
    %377 = vector.shape_cast %319 : vector<8x1xi1> to vector<8x1xi1>
    %378 = vector.broadcast %377 : vector<8x1xi1> to vector<8x32xi1>
    %379 = arith.select %378, %369, %4 : vector<8x32xi1>, vector<8x32xf32>
    %380 = arith.index_cast %305 : i32 to index
    %c0_82 = arith.constant 0 : index
    %c0_83 = arith.constant 0 : index
    %381 = vector.load %arg6[%380, %c0_82, %c0_83] : memref<8x8x32xf32, #tpu.memory_space<vmem>>, vector<1x8x32xf32>
    %382 = vector.shape_cast %381 : vector<1x8x32xf32> to vector<8x32xf32>
    %383 = vector.shape_cast %379 : vector<8x32xf32> to vector<1x8x32xf32>
    tpu.vector_store %arg6[%380, %c0_82, %c0_83], %383 {strides = array<i32>} : memref<8x8x32xf32, #tpu.memory_space<vmem>>, vector<1x8x32xf32>,
    %384 = vector.shape_cast %316 : vector<8x1xi1> to vector<8x1xi1>
    %385 = vector.broadcast %384 : vector<8x1xi1> to vector<8x32xi1>
    %386 = arith.select %385, %344, %290 : vector<8x32xi1>, vector<8x32xf32>
    %387 = vector.shape_cast %316 : vector<8x1xi1> to vector<8x1xi1>
    %388 = vector.broadcast %387 : vector<8x1xi1> to vector<8x32xi1>
    %389 = arith.select %388, %342, %293 : vector<8x32xi1>, vector<8x32xf32>
    %390 = vector.shape_cast %319 : vector<8x1xi1> to vector<8x1xi1>
    %391 = vector.broadcast %390 : vector<8x1xi1> to vector<8x32xi1>
    %392 = arith.select %391, %369, %296 : vector<8x32xi1>, vector<8x32xf32>
    %393 = vector.shape_cast %319 : vector<8x1xi1> to vector<8x1xi1>
    %394 = vector.broadcast %393 : vector<8x1xi1> to vector<8x32xi1>
    %395 = arith.select %394, %367, %299 : vector<8x32xi1>, vector<8x32xf32>
    %c4_i32 = arith.constant 4 : i32
    %396 = tpu.concatenate %386, %392 in 1 : vector<8x32xf32>, vector<8x32xf32> -> vector<8x64xf32>
    %c0_84 = arith.constant 0 : index
    %c0_85 = arith.constant 0 : index
    %397 = vector.load %arg4[%c0_84, %c0_85] : memref<64x256xf32, #tpu.memory_space<vmem>>, vector<64x256xf32>
    %cst_86 = arith.constant dense<0.000000e+00> : vector<8x256xf32>
    %398 = tpu.matmul %396, %397, %cst_86 {dimension_numbers = #tpu.dot_dimension_numbers<[1], [0], [0], [1], [0, 0, 1, 1], [], []>} : vector<8x64xf32>, vector<64x256xf32>, vector<8x256xf32> -> vector<8x256xf32>
    %399 = vector.extract_strided_slice %398 {offsets = [0, 0], sizes = [8, 128], strides = [1, 1]} : vector<8x256xf32> to vector<8x128xf32>
    %400 = vector.extract_strided_slice %398 {offsets = [0, 128], sizes = [8, 128], strides = [1, 1]} : vector<8x256xf32> to vector<8x128xf32>
    %c7_i32_87 = arith.constant 7 : i32
    %401 = arith.subi %c7_i32_87, %c4_i32 : i32
    %402 = arith.index_cast %c4_i32 : i32 to index
    %c0_88 = arith.constant 0 : index
    %c0_89 = arith.constant 0 : index
    %403 = vector.load %arg1[%402, %c0_88, %c0_89] : memref<8x8x128xf32, #tpu.memory_space<vmem>>, vector<1x8x128xf32>
    %404 = vector.shape_cast %403 : vector<1x8x128xf32> to vector<8x128xf32>
    %405 = arith.addf %404, %399 : vector<8x128xf32>
    %406 = arith.index_cast %401 : i32 to index
    %c0_90 = arith.constant 0 : index
    %c0_91 = arith.constant 0 : index
    %407 = vector.load %arg2[%406, %c0_90, %c0_91] : memref<8x8x128xf32, #tpu.memory_space<vmem>>, vector<1x8x128xf32>
    %408 = vector.shape_cast %407 : vector<1x8x128xf32> to vector<8x128xf32>
    %409 = arith.addf %408, %400 : vector<8x128xf32>
    %410 = arith.addi %5, %c4_i32 : i32
    %411 = vector.broadcast %410 : i32 to vector<8x1xi32>
    %412 = arith.cmpi slt, %411, %3 : vector<8x1xi32>
    %413 = arith.addi %7, %401 : i32
    %414 = vector.broadcast %413 : i32 to vector<8x1xi32>
    %415 = arith.cmpi slt, %414, %3 : vector<8x1xi32>
    %416 = vector.extract_strided_slice %405 {offsets = [0, 0], sizes = [8, 32], strides = [1, 1]} : vector<8x128xf32> to vector<8x32xf32>
    %417 = arith.negf %416 : vector<8x32xf32>
    %418 = math.exp %417 : vector<8x32xf32>
    %cst_92 = arith.constant 1.000000e+00 : f32
    %419 = vector.broadcast %cst_92 : f32 to vector<8x32xf32>
    %420 = arith.addf %419, %418 : vector<8x32xf32>
    %421 = arith.divf %419, %420 : vector<8x32xf32>
    %422 = vector.extract_strided_slice %405 {offsets = [0, 32], sizes = [8, 32], strides = [1, 1]} : vector<8x128xf32> to vector<8x32xf32>
    %423 = arith.negf %422 : vector<8x32xf32>
    %424 = math.exp %423 : vector<8x32xf32>
    %cst_93 = arith.constant 1.000000e+00 : f32
    %425 = vector.broadcast %cst_93 : f32 to vector<8x32xf32>
    %426 = arith.addf %425, %424 : vector<8x32xf32>
    %427 = arith.divf %425, %426 : vector<8x32xf32>
    %428 = vector.extract_strided_slice %405 {offsets = [0, 64], sizes = [8, 32], strides = [1, 1]} : vector<8x128xf32> to vector<8x32xf32>
    %429 = math.tanh %428 : vector<8x32xf32>
    %430 = vector.extract_strided_slice %405 {offsets = [0, 96], sizes = [8, 32], strides = [1, 1]} : vector<8x128xf32> to vector<8x32xf32>
    %431 = arith.negf %430 : vector<8x32xf32>
    %432 = math.exp %431 : vector<8x32xf32>
    %cst_94 = arith.constant 1.000000e+00 : f32
    %433 = vector.broadcast %cst_94 : f32 to vector<8x32xf32>
    %434 = arith.addf %433, %432 : vector<8x32xf32>
    %435 = arith.divf %433, %434 : vector<8x32xf32>
    %436 = arith.mulf %427, %389 : vector<8x32xf32>
    %437 = arith.mulf %421, %429 : vector<8x32xf32>
    %438 = arith.addf %436, %437 : vector<8x32xf32>
    %439 = math.tanh %438 : vector<8x32xf32>
    %440 = arith.mulf %435, %439 : vector<8x32xf32>
    %441 = vector.extract_strided_slice %409 {offsets = [0, 0], sizes = [8, 32], strides = [1, 1]} : vector<8x128xf32> to vector<8x32xf32>
    %442 = arith.negf %441 : vector<8x32xf32>
    %443 = math.exp %442 : vector<8x32xf32>
    %cst_95 = arith.constant 1.000000e+00 : f32
    %444 = vector.broadcast %cst_95 : f32 to vector<8x32xf32>
    %445 = arith.addf %444, %443 : vector<8x32xf32>
    %446 = arith.divf %444, %445 : vector<8x32xf32>
    %447 = vector.extract_strided_slice %409 {offsets = [0, 32], sizes = [8, 32], strides = [1, 1]} : vector<8x128xf32> to vector<8x32xf32>
    %448 = arith.negf %447 : vector<8x32xf32>
    %449 = math.exp %448 : vector<8x32xf32>
    %cst_96 = arith.constant 1.000000e+00 : f32
    %450 = vector.broadcast %cst_96 : f32 to vector<8x32xf32>
    %451 = arith.addf %450, %449 : vector<8x32xf32>
    %452 = arith.divf %450, %451 : vector<8x32xf32>
    %453 = vector.extract_strided_slice %409 {offsets = [0, 64], sizes = [8, 32], strides = [1, 1]} : vector<8x128xf32> to vector<8x32xf32>
    %454 = math.tanh %453 : vector<8x32xf32>
    %455 = vector.extract_strided_slice %409 {offsets = [0, 96], sizes = [8, 32], strides = [1, 1]} : vector<8x128xf32> to vector<8x32xf32>
    %456 = arith.negf %455 : vector<8x32xf32>
    %457 = math.exp %456 : vector<8x32xf32>
    %cst_97 = arith.constant 1.000000e+00 : f32
    %458 = vector.broadcast %cst_97 : f32 to vector<8x32xf32>
    %459 = arith.addf %458, %457 : vector<8x32xf32>
    %460 = arith.divf %458, %459 : vector<8x32xf32>
    %461 = arith.mulf %452, %395 : vector<8x32xf32>
    %462 = arith.mulf %446, %454 : vector<8x32xf32>
    %463 = arith.addf %461, %462 : vector<8x32xf32>
    %464 = math.tanh %463 : vector<8x32xf32>
    %465 = arith.mulf %460, %464 : vector<8x32xf32>
    %466 = vector.shape_cast %412 : vector<8x1xi1> to vector<8x1xi1>
    %467 = vector.broadcast %466 : vector<8x1xi1> to vector<8x32xi1>
    %468 = arith.select %467, %440, %4 : vector<8x32xi1>, vector<8x32xf32>
    %469 = arith.index_cast %c4_i32 : i32 to index
    %c0_98 = arith.constant 0 : index
    %c0_99 = arith.constant 0 : index
    %470 = vector.load %arg5[%469, %c0_98, %c0_99] : memref<8x8x32xf32, #tpu.memory_space<vmem>>, vector<1x8x32xf32>
    %471 = vector.shape_cast %470 : vector<1x8x32xf32> to vector<8x32xf32>
    %472 = vector.shape_cast %468 : vector<8x32xf32> to vector<1x8x32xf32>
    tpu.vector_store %arg5[%469, %c0_98, %c0_99], %472 {strides = array<i32>} : memref<8x8x32xf32, #tpu.memory_space<vmem>>, vector<1x8x32xf32>,
    %473 = vector.shape_cast %415 : vector<8x1xi1> to vector<8x1xi1>
    %474 = vector.broadcast %473 : vector<8x1xi1> to vector<8x32xi1>
    %475 = arith.select %474, %465, %4 : vector<8x32xi1>, vector<8x32xf32>
    %476 = arith.index_cast %401 : i32 to index
    %c0_100 = arith.constant 0 : index
    %c0_101 = arith.constant 0 : index
    %477 = vector.load %arg6[%476, %c0_100, %c0_101] : memref<8x8x32xf32, #tpu.memory_space<vmem>>, vector<1x8x32xf32>
    %478 = vector.shape_cast %477 : vector<1x8x32xf32> to vector<8x32xf32>
    %479 = vector.shape_cast %475 : vector<8x32xf32> to vector<1x8x32xf32>
    tpu.vector_store %arg6[%476, %c0_100, %c0_101], %479 {strides = array<i32>} : memref<8x8x32xf32, #tpu.memory_space<vmem>>, vector<1x8x32xf32>,
    %480 = vector.shape_cast %412 : vector<8x1xi1> to vector<8x1xi1>
    %481 = vector.broadcast %480 : vector<8x1xi1> to vector<8x32xi1>
    %482 = arith.select %481, %440, %386 : vector<8x32xi1>, vector<8x32xf32>
    %483 = vector.shape_cast %412 : vector<8x1xi1> to vector<8x1xi1>
    %484 = vector.broadcast %483 : vector<8x1xi1> to vector<8x32xi1>
    %485 = arith.select %484, %438, %389 : vector<8x32xi1>, vector<8x32xf32>
    %486 = vector.shape_cast %415 : vector<8x1xi1> to vector<8x1xi1>
    %487 = vector.broadcast %486 : vector<8x1xi1> to vector<8x32xi1>
    %488 = arith.select %487, %465, %392 : vector<8x32xi1>, vector<8x32xf32>
    %489 = vector.shape_cast %415 : vector<8x1xi1> to vector<8x1xi1>
    %490 = vector.broadcast %489 : vector<8x1xi1> to vector<8x32xi1>
    %491 = arith.select %490, %463, %395 : vector<8x32xi1>, vector<8x32xf32>
    %c5_i32 = arith.constant 5 : i32
    %492 = tpu.concatenate %482, %488 in 1 : vector<8x32xf32>, vector<8x32xf32> -> vector<8x64xf32>
    %c0_102 = arith.constant 0 : index
    %c0_103 = arith.constant 0 : index
    %493 = vector.load %arg4[%c0_102, %c0_103] : memref<64x256xf32, #tpu.memory_space<vmem>>, vector<64x256xf32>
    %cst_104 = arith.constant dense<0.000000e+00> : vector<8x256xf32>
    %494 = tpu.matmul %492, %493, %cst_104 {dimension_numbers = #tpu.dot_dimension_numbers<[1], [0], [0], [1], [0, 0, 1, 1], [], []>} : vector<8x64xf32>, vector<64x256xf32>, vector<8x256xf32> -> vector<8x256xf32>
    %495 = vector.extract_strided_slice %494 {offsets = [0, 0], sizes = [8, 128], strides = [1, 1]} : vector<8x256xf32> to vector<8x128xf32>
    %496 = vector.extract_strided_slice %494 {offsets = [0, 128], sizes = [8, 128], strides = [1, 1]} : vector<8x256xf32> to vector<8x128xf32>
    %c7_i32_105 = arith.constant 7 : i32
    %497 = arith.subi %c7_i32_105, %c5_i32 : i32
    %498 = arith.index_cast %c5_i32 : i32 to index
    %c0_106 = arith.constant 0 : index
    %c0_107 = arith.constant 0 : index
    %499 = vector.load %arg1[%498, %c0_106, %c0_107] : memref<8x8x128xf32, #tpu.memory_space<vmem>>, vector<1x8x128xf32>
    %500 = vector.shape_cast %499 : vector<1x8x128xf32> to vector<8x128xf32>
    %501 = arith.addf %500, %495 : vector<8x128xf32>
    %502 = arith.index_cast %497 : i32 to index
    %c0_108 = arith.constant 0 : index
    %c0_109 = arith.constant 0 : index
    %503 = vector.load %arg2[%502, %c0_108, %c0_109] : memref<8x8x128xf32, #tpu.memory_space<vmem>>, vector<1x8x128xf32>
    %504 = vector.shape_cast %503 : vector<1x8x128xf32> to vector<8x128xf32>
    %505 = arith.addf %504, %496 : vector<8x128xf32>
    %506 = arith.addi %5, %c5_i32 : i32
    %507 = vector.broadcast %506 : i32 to vector<8x1xi32>
    %508 = arith.cmpi slt, %507, %3 : vector<8x1xi32>
    %509 = arith.addi %7, %497 : i32
    %510 = vector.broadcast %509 : i32 to vector<8x1xi32>
    %511 = arith.cmpi slt, %510, %3 : vector<8x1xi32>
    %512 = vector.extract_strided_slice %501 {offsets = [0, 0], sizes = [8, 32], strides = [1, 1]} : vector<8x128xf32> to vector<8x32xf32>
    %513 = arith.negf %512 : vector<8x32xf32>
    %514 = math.exp %513 : vector<8x32xf32>
    %cst_110 = arith.constant 1.000000e+00 : f32
    %515 = vector.broadcast %cst_110 : f32 to vector<8x32xf32>
    %516 = arith.addf %515, %514 : vector<8x32xf32>
    %517 = arith.divf %515, %516 : vector<8x32xf32>
    %518 = vector.extract_strided_slice %501 {offsets = [0, 32], sizes = [8, 32], strides = [1, 1]} : vector<8x128xf32> to vector<8x32xf32>
    %519 = arith.negf %518 : vector<8x32xf32>
    %520 = math.exp %519 : vector<8x32xf32>
    %cst_111 = arith.constant 1.000000e+00 : f32
    %521 = vector.broadcast %cst_111 : f32 to vector<8x32xf32>
    %522 = arith.addf %521, %520 : vector<8x32xf32>
    %523 = arith.divf %521, %522 : vector<8x32xf32>
    %524 = vector.extract_strided_slice %501 {offsets = [0, 64], sizes = [8, 32], strides = [1, 1]} : vector<8x128xf32> to vector<8x32xf32>
    %525 = math.tanh %524 : vector<8x32xf32>
    %526 = vector.extract_strided_slice %501 {offsets = [0, 96], sizes = [8, 32], strides = [1, 1]} : vector<8x128xf32> to vector<8x32xf32>
    %527 = arith.negf %526 : vector<8x32xf32>
    %528 = math.exp %527 : vector<8x32xf32>
    %cst_112 = arith.constant 1.000000e+00 : f32
    %529 = vector.broadcast %cst_112 : f32 to vector<8x32xf32>
    %530 = arith.addf %529, %528 : vector<8x32xf32>
    %531 = arith.divf %529, %530 : vector<8x32xf32>
    %532 = arith.mulf %523, %485 : vector<8x32xf32>
    %533 = arith.mulf %517, %525 : vector<8x32xf32>
    %534 = arith.addf %532, %533 : vector<8x32xf32>
    %535 = math.tanh %534 : vector<8x32xf32>
    %536 = arith.mulf %531, %535 : vector<8x32xf32>
    %537 = vector.extract_strided_slice %505 {offsets = [0, 0], sizes = [8, 32], strides = [1, 1]} : vector<8x128xf32> to vector<8x32xf32>
    %538 = arith.negf %537 : vector<8x32xf32>
    %539 = math.exp %538 : vector<8x32xf32>
    %cst_113 = arith.constant 1.000000e+00 : f32
    %540 = vector.broadcast %cst_113 : f32 to vector<8x32xf32>
    %541 = arith.addf %540, %539 : vector<8x32xf32>
    %542 = arith.divf %540, %541 : vector<8x32xf32>
    %543 = vector.extract_strided_slice %505 {offsets = [0, 32], sizes = [8, 32], strides = [1, 1]} : vector<8x128xf32> to vector<8x32xf32>
    %544 = arith.negf %543 : vector<8x32xf32>
    %545 = math.exp %544 : vector<8x32xf32>
    %cst_114 = arith.constant 1.000000e+00 : f32
    %546 = vector.broadcast %cst_114 : f32 to vector<8x32xf32>
    %547 = arith.addf %546, %545 : vector<8x32xf32>
    %548 = arith.divf %546, %547 : vector<8x32xf32>
    %549 = vector.extract_strided_slice %505 {offsets = [0, 64], sizes = [8, 32], strides = [1, 1]} : vector<8x128xf32> to vector<8x32xf32>
    %550 = math.tanh %549 : vector<8x32xf32>
    %551 = vector.extract_strided_slice %505 {offsets = [0, 96], sizes = [8, 32], strides = [1, 1]} : vector<8x128xf32> to vector<8x32xf32>
    %552 = arith.negf %551 : vector<8x32xf32>
    %553 = math.exp %552 : vector<8x32xf32>
    %cst_115 = arith.constant 1.000000e+00 : f32
    %554 = vector.broadcast %cst_115 : f32 to vector<8x32xf32>
    %555 = arith.addf %554, %553 : vector<8x32xf32>
    %556 = arith.divf %554, %555 : vector<8x32xf32>
    %557 = arith.mulf %548, %491 : vector<8x32xf32>
    %558 = arith.mulf %542, %550 : vector<8x32xf32>
    %559 = arith.addf %557, %558 : vector<8x32xf32>
    %560 = math.tanh %559 : vector<8x32xf32>
    %561 = arith.mulf %556, %560 : vector<8x32xf32>
    %562 = vector.shape_cast %508 : vector<8x1xi1> to vector<8x1xi1>
    %563 = vector.broadcast %562 : vector<8x1xi1> to vector<8x32xi1>
    %564 = arith.select %563, %536, %4 : vector<8x32xi1>, vector<8x32xf32>
    %565 = arith.index_cast %c5_i32 : i32 to index
    %c0_116 = arith.constant 0 : index
    %c0_117 = arith.constant 0 : index
    %566 = vector.load %arg5[%565, %c0_116, %c0_117] : memref<8x8x32xf32, #tpu.memory_space<vmem>>, vector<1x8x32xf32>
    %567 = vector.shape_cast %566 : vector<1x8x32xf32> to vector<8x32xf32>
    %568 = vector.shape_cast %564 : vector<8x32xf32> to vector<1x8x32xf32>
    tpu.vector_store %arg5[%565, %c0_116, %c0_117], %568 {strides = array<i32>} : memref<8x8x32xf32, #tpu.memory_space<vmem>>, vector<1x8x32xf32>,
    %569 = vector.shape_cast %511 : vector<8x1xi1> to vector<8x1xi1>
    %570 = vector.broadcast %569 : vector<8x1xi1> to vector<8x32xi1>
    %571 = arith.select %570, %561, %4 : vector<8x32xi1>, vector<8x32xf32>
    %572 = arith.index_cast %497 : i32 to index
    %c0_118 = arith.constant 0 : index
    %c0_119 = arith.constant 0 : index
    %573 = vector.load %arg6[%572, %c0_118, %c0_119] : memref<8x8x32xf32, #tpu.memory_space<vmem>>, vector<1x8x32xf32>
    %574 = vector.shape_cast %573 : vector<1x8x32xf32> to vector<8x32xf32>
    %575 = vector.shape_cast %571 : vector<8x32xf32> to vector<1x8x32xf32>
    tpu.vector_store %arg6[%572, %c0_118, %c0_119], %575 {strides = array<i32>} : memref<8x8x32xf32, #tpu.memory_space<vmem>>, vector<1x8x32xf32>,
    %576 = vector.shape_cast %508 : vector<8x1xi1> to vector<8x1xi1>
    %577 = vector.broadcast %576 : vector<8x1xi1> to vector<8x32xi1>
    %578 = arith.select %577, %536, %482 : vector<8x32xi1>, vector<8x32xf32>
    %579 = vector.shape_cast %508 : vector<8x1xi1> to vector<8x1xi1>
    %580 = vector.broadcast %579 : vector<8x1xi1> to vector<8x32xi1>
    %581 = arith.select %580, %534, %485 : vector<8x32xi1>, vector<8x32xf32>
    %582 = vector.shape_cast %511 : vector<8x1xi1> to vector<8x1xi1>
    %583 = vector.broadcast %582 : vector<8x1xi1> to vector<8x32xi1>
    %584 = arith.select %583, %561, %488 : vector<8x32xi1>, vector<8x32xf32>
    %585 = vector.shape_cast %511 : vector<8x1xi1> to vector<8x1xi1>
    %586 = vector.broadcast %585 : vector<8x1xi1> to vector<8x32xi1>
    %587 = arith.select %586, %559, %491 : vector<8x32xi1>, vector<8x32xf32>
    %c6_i32 = arith.constant 6 : i32
    %588 = tpu.concatenate %578, %584 in 1 : vector<8x32xf32>, vector<8x32xf32> -> vector<8x64xf32>
    %c0_120 = arith.constant 0 : index
    %c0_121 = arith.constant 0 : index
    %589 = vector.load %arg4[%c0_120, %c0_121] : memref<64x256xf32, #tpu.memory_space<vmem>>, vector<64x256xf32>
    %cst_122 = arith.constant dense<0.000000e+00> : vector<8x256xf32>
    %590 = tpu.matmul %588, %589, %cst_122 {dimension_numbers = #tpu.dot_dimension_numbers<[1], [0], [0], [1], [0, 0, 1, 1], [], []>} : vector<8x64xf32>, vector<64x256xf32>, vector<8x256xf32> -> vector<8x256xf32>
    %591 = vector.extract_strided_slice %590 {offsets = [0, 0], sizes = [8, 128], strides = [1, 1]} : vector<8x256xf32> to vector<8x128xf32>
    %592 = vector.extract_strided_slice %590 {offsets = [0, 128], sizes = [8, 128], strides = [1, 1]} : vector<8x256xf32> to vector<8x128xf32>
    %c7_i32_123 = arith.constant 7 : i32
    %593 = arith.subi %c7_i32_123, %c6_i32 : i32
    %594 = arith.index_cast %c6_i32 : i32 to index
    %c0_124 = arith.constant 0 : index
    %c0_125 = arith.constant 0 : index
    %595 = vector.load %arg1[%594, %c0_124, %c0_125] : memref<8x8x128xf32, #tpu.memory_space<vmem>>, vector<1x8x128xf32>
    %596 = vector.shape_cast %595 : vector<1x8x128xf32> to vector<8x128xf32>
    %597 = arith.addf %596, %591 : vector<8x128xf32>
    %598 = arith.index_cast %593 : i32 to index
    %c0_126 = arith.constant 0 : index
    %c0_127 = arith.constant 0 : index
    %599 = vector.load %arg2[%598, %c0_126, %c0_127] : memref<8x8x128xf32, #tpu.memory_space<vmem>>, vector<1x8x128xf32>
    %600 = vector.shape_cast %599 : vector<1x8x128xf32> to vector<8x128xf32>
    %601 = arith.addf %600, %592 : vector<8x128xf32>
    %602 = arith.addi %5, %c6_i32 : i32
    %603 = vector.broadcast %602 : i32 to vector<8x1xi32>
    %604 = arith.cmpi slt, %603, %3 : vector<8x1xi32>
    %605 = arith.addi %7, %593 : i32
    %606 = vector.broadcast %605 : i32 to vector<8x1xi32>
    %607 = arith.cmpi slt, %606, %3 : vector<8x1xi32>
    %608 = vector.extract_strided_slice %597 {offsets = [0, 0], sizes = [8, 32], strides = [1, 1]} : vector<8x128xf32> to vector<8x32xf32>
    %609 = arith.negf %608 : vector<8x32xf32>
    %610 = math.exp %609 : vector<8x32xf32>
    %cst_128 = arith.constant 1.000000e+00 : f32
    %611 = vector.broadcast %cst_128 : f32 to vector<8x32xf32>
    %612 = arith.addf %611, %610 : vector<8x32xf32>
    %613 = arith.divf %611, %612 : vector<8x32xf32>
    %614 = vector.extract_strided_slice %597 {offsets = [0, 32], sizes = [8, 32], strides = [1, 1]} : vector<8x128xf32> to vector<8x32xf32>
    %615 = arith.negf %614 : vector<8x32xf32>
    %616 = math.exp %615 : vector<8x32xf32>
    %cst_129 = arith.constant 1.000000e+00 : f32
    %617 = vector.broadcast %cst_129 : f32 to vector<8x32xf32>
    %618 = arith.addf %617, %616 : vector<8x32xf32>
    %619 = arith.divf %617, %618 : vector<8x32xf32>
    %620 = vector.extract_strided_slice %597 {offsets = [0, 64], sizes = [8, 32], strides = [1, 1]} : vector<8x128xf32> to vector<8x32xf32>
    %621 = math.tanh %620 : vector<8x32xf32>
    %622 = vector.extract_strided_slice %597 {offsets = [0, 96], sizes = [8, 32], strides = [1, 1]} : vector<8x128xf32> to vector<8x32xf32>
    %623 = arith.negf %622 : vector<8x32xf32>
    %624 = math.exp %623 : vector<8x32xf32>
    %cst_130 = arith.constant 1.000000e+00 : f32
    %625 = vector.broadcast %cst_130 : f32 to vector<8x32xf32>
    %626 = arith.addf %625, %624 : vector<8x32xf32>
    %627 = arith.divf %625, %626 : vector<8x32xf32>
    %628 = arith.mulf %619, %581 : vector<8x32xf32>
    %629 = arith.mulf %613, %621 : vector<8x32xf32>
    %630 = arith.addf %628, %629 : vector<8x32xf32>
    %631 = math.tanh %630 : vector<8x32xf32>
    %632 = arith.mulf %627, %631 : vector<8x32xf32>
    %633 = vector.extract_strided_slice %601 {offsets = [0, 0], sizes = [8, 32], strides = [1, 1]} : vector<8x128xf32> to vector<8x32xf32>
    %634 = arith.negf %633 : vector<8x32xf32>
    %635 = math.exp %634 : vector<8x32xf32>
    %cst_131 = arith.constant 1.000000e+00 : f32
    %636 = vector.broadcast %cst_131 : f32 to vector<8x32xf32>
    %637 = arith.addf %636, %635 : vector<8x32xf32>
    %638 = arith.divf %636, %637 : vector<8x32xf32>
    %639 = vector.extract_strided_slice %601 {offsets = [0, 32], sizes = [8, 32], strides = [1, 1]} : vector<8x128xf32> to vector<8x32xf32>
    %640 = arith.negf %639 : vector<8x32xf32>
    %641 = math.exp %640 : vector<8x32xf32>
    %cst_132 = arith.constant 1.000000e+00 : f32
    %642 = vector.broadcast %cst_132 : f32 to vector<8x32xf32>
    %643 = arith.addf %642, %641 : vector<8x32xf32>
    %644 = arith.divf %642, %643 : vector<8x32xf32>
    %645 = vector.extract_strided_slice %601 {offsets = [0, 64], sizes = [8, 32], strides = [1, 1]} : vector<8x128xf32> to vector<8x32xf32>
    %646 = math.tanh %645 : vector<8x32xf32>
    %647 = vector.extract_strided_slice %601 {offsets = [0, 96], sizes = [8, 32], strides = [1, 1]} : vector<8x128xf32> to vector<8x32xf32>
    %648 = arith.negf %647 : vector<8x32xf32>
    %649 = math.exp %648 : vector<8x32xf32>
    %cst_133 = arith.constant 1.000000e+00 : f32
    %650 = vector.broadcast %cst_133 : f32 to vector<8x32xf32>
    %651 = arith.addf %650, %649 : vector<8x32xf32>
    %652 = arith.divf %650, %651 : vector<8x32xf32>
    %653 = arith.mulf %644, %587 : vector<8x32xf32>
    %654 = arith.mulf %638, %646 : vector<8x32xf32>
    %655 = arith.addf %653, %654 : vector<8x32xf32>
    %656 = math.tanh %655 : vector<8x32xf32>
    %657 = arith.mulf %652, %656 : vector<8x32xf32>
    %658 = vector.shape_cast %604 : vector<8x1xi1> to vector<8x1xi1>
    %659 = vector.broadcast %658 : vector<8x1xi1> to vector<8x32xi1>
    %660 = arith.select %659, %632, %4 : vector<8x32xi1>, vector<8x32xf32>
    %661 = arith.index_cast %c6_i32 : i32 to index
    %c0_134 = arith.constant 0 : index
    %c0_135 = arith.constant 0 : index
    %662 = vector.load %arg5[%661, %c0_134, %c0_135] : memref<8x8x32xf32, #tpu.memory_space<vmem>>, vector<1x8x32xf32>
    %663 = vector.shape_cast %662 : vector<1x8x32xf32> to vector<8x32xf32>
    %664 = vector.shape_cast %660 : vector<8x32xf32> to vector<1x8x32xf32>
    tpu.vector_store %arg5[%661, %c0_134, %c0_135], %664 {strides = array<i32>} : memref<8x8x32xf32, #tpu.memory_space<vmem>>, vector<1x8x32xf32>,
    %665 = vector.shape_cast %607 : vector<8x1xi1> to vector<8x1xi1>
    %666 = vector.broadcast %665 : vector<8x1xi1> to vector<8x32xi1>
    %667 = arith.select %666, %657, %4 : vector<8x32xi1>, vector<8x32xf32>
    %668 = arith.index_cast %593 : i32 to index
    %c0_136 = arith.constant 0 : index
    %c0_137 = arith.constant 0 : index
    %669 = vector.load %arg6[%668, %c0_136, %c0_137] : memref<8x8x32xf32, #tpu.memory_space<vmem>>, vector<1x8x32xf32>
    %670 = vector.shape_cast %669 : vector<1x8x32xf32> to vector<8x32xf32>
    %671 = vector.shape_cast %667 : vector<8x32xf32> to vector<1x8x32xf32>
    tpu.vector_store %arg6[%668, %c0_136, %c0_137], %671 {strides = array<i32>} : memref<8x8x32xf32, #tpu.memory_space<vmem>>, vector<1x8x32xf32>,
    %672 = vector.shape_cast %604 : vector<8x1xi1> to vector<8x1xi1>
    %673 = vector.broadcast %672 : vector<8x1xi1> to vector<8x32xi1>
    %674 = arith.select %673, %632, %578 : vector<8x32xi1>, vector<8x32xf32>
    %675 = vector.shape_cast %604 : vector<8x1xi1> to vector<8x1xi1>
    %676 = vector.broadcast %675 : vector<8x1xi1> to vector<8x32xi1>
    %677 = arith.select %676, %630, %581 : vector<8x32xi1>, vector<8x32xf32>
    %678 = vector.shape_cast %607 : vector<8x1xi1> to vector<8x1xi1>
    %679 = vector.broadcast %678 : vector<8x1xi1> to vector<8x32xi1>
    %680 = arith.select %679, %657, %584 : vector<8x32xi1>, vector<8x32xf32>
    %681 = vector.shape_cast %607 : vector<8x1xi1> to vector<8x1xi1>
    %682 = vector.broadcast %681 : vector<8x1xi1> to vector<8x32xi1>
    %683 = arith.select %682, %655, %587 : vector<8x32xi1>, vector<8x32xf32>
    %c7_i32_138 = arith.constant 7 : i32
    %684 = tpu.concatenate %674, %680 in 1 : vector<8x32xf32>, vector<8x32xf32> -> vector<8x64xf32>
    %c0_139 = arith.constant 0 : index
    %c0_140 = arith.constant 0 : index
    %685 = vector.load %arg4[%c0_139, %c0_140] : memref<64x256xf32, #tpu.memory_space<vmem>>, vector<64x256xf32>
    %cst_141 = arith.constant dense<0.000000e+00> : vector<8x256xf32>
    %686 = tpu.matmul %684, %685, %cst_141 {dimension_numbers = #tpu.dot_dimension_numbers<[1], [0], [0], [1], [0, 0, 1, 1], [], []>} : vector<8x64xf32>, vector<64x256xf32>, vector<8x256xf32> -> vector<8x256xf32>
    %687 = vector.extract_strided_slice %686 {offsets = [0, 0], sizes = [8, 128], strides = [1, 1]} : vector<8x256xf32> to vector<8x128xf32>
    %688 = vector.extract_strided_slice %686 {offsets = [0, 128], sizes = [8, 128], strides = [1, 1]} : vector<8x256xf32> to vector<8x128xf32>
    %c7_i32_142 = arith.constant 7 : i32
    %689 = arith.subi %c7_i32_142, %c7_i32_138 : i32
    %690 = arith.index_cast %c7_i32_138 : i32 to index
    %c0_143 = arith.constant 0 : index
    %c0_144 = arith.constant 0 : index
    %691 = vector.load %arg1[%690, %c0_143, %c0_144] : memref<8x8x128xf32, #tpu.memory_space<vmem>>, vector<1x8x128xf32>
    %692 = vector.shape_cast %691 : vector<1x8x128xf32> to vector<8x128xf32>
    %693 = arith.addf %692, %687 : vector<8x128xf32>
    %694 = arith.index_cast %689 : i32 to index
    %c0_145 = arith.constant 0 : index
    %c0_146 = arith.constant 0 : index
    %695 = vector.load %arg2[%694, %c0_145, %c0_146] : memref<8x8x128xf32, #tpu.memory_space<vmem>>, vector<1x8x128xf32>
    %696 = vector.shape_cast %695 : vector<1x8x128xf32> to vector<8x128xf32>
    %697 = arith.addf %696, %688 : vector<8x128xf32>
    %698 = arith.addi %5, %c7_i32_138 : i32
    %699 = vector.broadcast %698 : i32 to vector<8x1xi32>
    %700 = arith.cmpi slt, %699, %3 : vector<8x1xi32>
    %701 = arith.addi %7, %689 : i32
    %702 = vector.broadcast %701 : i32 to vector<8x1xi32>
    %703 = arith.cmpi slt, %702, %3 : vector<8x1xi32>
    %704 = vector.extract_strided_slice %693 {offsets = [0, 0], sizes = [8, 32], strides = [1, 1]} : vector<8x128xf32> to vector<8x32xf32>
    %705 = arith.negf %704 : vector<8x32xf32>
    %706 = math.exp %705 : vector<8x32xf32>
    %cst_147 = arith.constant 1.000000e+00 : f32
    %707 = vector.broadcast %cst_147 : f32 to vector<8x32xf32>
    %708 = arith.addf %707, %706 : vector<8x32xf32>
    %709 = arith.divf %707, %708 : vector<8x32xf32>
    %710 = vector.extract_strided_slice %693 {offsets = [0, 32], sizes = [8, 32], strides = [1, 1]} : vector<8x128xf32> to vector<8x32xf32>
    %711 = arith.negf %710 : vector<8x32xf32>
    %712 = math.exp %711 : vector<8x32xf32>
    %cst_148 = arith.constant 1.000000e+00 : f32
    %713 = vector.broadcast %cst_148 : f32 to vector<8x32xf32>
    %714 = arith.addf %713, %712 : vector<8x32xf32>
    %715 = arith.divf %713, %714 : vector<8x32xf32>
    %716 = vector.extract_strided_slice %693 {offsets = [0, 64], sizes = [8, 32], strides = [1, 1]} : vector<8x128xf32> to vector<8x32xf32>
    %717 = math.tanh %716 : vector<8x32xf32>
    %718 = vector.extract_strided_slice %693 {offsets = [0, 96], sizes = [8, 32], strides = [1, 1]} : vector<8x128xf32> to vector<8x32xf32>
    %719 = arith.negf %718 : vector<8x32xf32>
    %720 = math.exp %719 : vector<8x32xf32>
    %cst_149 = arith.constant 1.000000e+00 : f32
    %721 = vector.broadcast %cst_149 : f32 to vector<8x32xf32>
    %722 = arith.addf %721, %720 : vector<8x32xf32>
    %723 = arith.divf %721, %722 : vector<8x32xf32>
    %724 = arith.mulf %715, %677 : vector<8x32xf32>
    %725 = arith.mulf %709, %717 : vector<8x32xf32>
    %726 = arith.addf %724, %725 : vector<8x32xf32>
    %727 = math.tanh %726 : vector<8x32xf32>
    %728 = arith.mulf %723, %727 : vector<8x32xf32>
    %729 = vector.extract_strided_slice %697 {offsets = [0, 0], sizes = [8, 32], strides = [1, 1]} : vector<8x128xf32> to vector<8x32xf32>
    %730 = arith.negf %729 : vector<8x32xf32>
    %731 = math.exp %730 : vector<8x32xf32>
    %cst_150 = arith.constant 1.000000e+00 : f32
    %732 = vector.broadcast %cst_150 : f32 to vector<8x32xf32>
    %733 = arith.addf %732, %731 : vector<8x32xf32>
    %734 = arith.divf %732, %733 : vector<8x32xf32>
    %735 = vector.extract_strided_slice %697 {offsets = [0, 32], sizes = [8, 32], strides = [1, 1]} : vector<8x128xf32> to vector<8x32xf32>
    %736 = arith.negf %735 : vector<8x32xf32>
    %737 = math.exp %736 : vector<8x32xf32>
    %cst_151 = arith.constant 1.000000e+00 : f32
    %738 = vector.broadcast %cst_151 : f32 to vector<8x32xf32>
    %739 = arith.addf %738, %737 : vector<8x32xf32>
    %740 = arith.divf %738, %739 : vector<8x32xf32>
    %741 = vector.extract_strided_slice %697 {offsets = [0, 64], sizes = [8, 32], strides = [1, 1]} : vector<8x128xf32> to vector<8x32xf32>
    %742 = math.tanh %741 : vector<8x32xf32>
    %743 = vector.extract_strided_slice %697 {offsets = [0, 96], sizes = [8, 32], strides = [1, 1]} : vector<8x128xf32> to vector<8x32xf32>
    %744 = arith.negf %743 : vector<8x32xf32>
    %745 = math.exp %744 : vector<8x32xf32>
    %cst_152 = arith.constant 1.000000e+00 : f32
    %746 = vector.broadcast %cst_152 : f32 to vector<8x32xf32>
    %747 = arith.addf %746, %745 : vector<8x32xf32>
    %748 = arith.divf %746, %747 : vector<8x32xf32>
    %749 = arith.mulf %740, %683 : vector<8x32xf32>
    %750 = arith.mulf %734, %742 : vector<8x32xf32>
    %751 = arith.addf %749, %750 : vector<8x32xf32>
    %752 = math.tanh %751 : vector<8x32xf32>
    %753 = arith.mulf %748, %752 : vector<8x32xf32>
    %754 = vector.shape_cast %700 : vector<8x1xi1> to vector<8x1xi1>
    %755 = vector.broadcast %754 : vector<8x1xi1> to vector<8x32xi1>
    %756 = arith.select %755, %728, %4 : vector<8x32xi1>, vector<8x32xf32>
    %757 = arith.index_cast %c7_i32_138 : i32 to index
    %c0_153 = arith.constant 0 : index
    %c0_154 = arith.constant 0 : index
    %758 = vector.load %arg5[%757, %c0_153, %c0_154] : memref<8x8x32xf32, #tpu.memory_space<vmem>>, vector<1x8x32xf32>
    %759 = vector.shape_cast %758 : vector<1x8x32xf32> to vector<8x32xf32>
    %760 = vector.shape_cast %756 : vector<8x32xf32> to vector<1x8x32xf32>
    tpu.vector_store %arg5[%757, %c0_153, %c0_154], %760 {strides = array<i32>} : memref<8x8x32xf32, #tpu.memory_space<vmem>>, vector<1x8x32xf32>,
    %761 = vector.shape_cast %703 : vector<8x1xi1> to vector<8x1xi1>
    %762 = vector.broadcast %761 : vector<8x1xi1> to vector<8x32xi1>
    %763 = arith.select %762, %753, %4 : vector<8x32xi1>, vector<8x32xf32>
    %764 = arith.index_cast %689 : i32 to index
    %c0_155 = arith.constant 0 : index
    %c0_156 = arith.constant 0 : index
    %765 = vector.load %arg6[%764, %c0_155, %c0_156] : memref<8x8x32xf32, #tpu.memory_space<vmem>>, vector<1x8x32xf32>
    %766 = vector.shape_cast %765 : vector<1x8x32xf32> to vector<8x32xf32>
    %767 = vector.shape_cast %763 : vector<8x32xf32> to vector<1x8x32xf32>
    tpu.vector_store %arg6[%764, %c0_155, %c0_156], %767 {strides = array<i32>} : memref<8x8x32xf32, #tpu.memory_space<vmem>>, vector<1x8x32xf32>,
    %768 = vector.shape_cast %700 : vector<8x1xi1> to vector<8x1xi1>
    %769 = vector.broadcast %768 : vector<8x1xi1> to vector<8x32xi1>
    %770 = arith.select %769, %728, %674 : vector<8x32xi1>, vector<8x32xf32>
    %771 = vector.shape_cast %700 : vector<8x1xi1> to vector<8x1xi1>
    %772 = vector.broadcast %771 : vector<8x1xi1> to vector<8x32xi1>
    %773 = arith.select %772, %726, %677 : vector<8x32xi1>, vector<8x32xf32>
    %774 = vector.shape_cast %703 : vector<8x1xi1> to vector<8x1xi1>
    %775 = vector.broadcast %774 : vector<8x1xi1> to vector<8x32xi1>
    %776 = arith.select %775, %753, %680 : vector<8x32xi1>, vector<8x32xf32>
    %777 = vector.shape_cast %703 : vector<8x1xi1> to vector<8x1xi1>
    %778 = vector.broadcast %777 : vector<8x1xi1> to vector<8x32xi1>
    %779 = arith.select %778, %751, %683 : vector<8x32xi1>, vector<8x32xf32>
    %c8_i32_157 = arith.constant 8 : i32
    %c0_158 = arith.constant 0 : index
    %c0_159 = arith.constant 0 : index
    %780 = vector.load %arg11[%c0_158, %c0_159] : memref<8x32xf32, #tpu.memory_space<vmem>>, vector<8x32xf32>
    tpu.vector_store %arg11[%c0_158, %c0_159], %770 {strides = array<i32>} : memref<8x32xf32, #tpu.memory_space<vmem>>, vector<8x32xf32>,
    %c0_160 = arith.constant 0 : index
    %c0_161 = arith.constant 0 : index
    %781 = vector.load %arg12[%c0_160, %c0_161] : memref<8x32xf32, #tpu.memory_space<vmem>>, vector<8x32xf32>
    tpu.vector_store %arg12[%c0_160, %c0_161], %773 {strides = array<i32>} : memref<8x32xf32, #tpu.memory_space<vmem>>, vector<8x32xf32>,
    %c0_162 = arith.constant 0 : index
    %c0_163 = arith.constant 0 : index
    %782 = vector.load %arg13[%c0_162, %c0_163] : memref<8x32xf32, #tpu.memory_space<vmem>>, vector<8x32xf32>
    tpu.vector_store %arg13[%c0_162, %c0_163], %776 {strides = array<i32>} : memref<8x32xf32, #tpu.memory_space<vmem>>, vector<8x32xf32>,
    %c0_164 = arith.constant 0 : index
    %c0_165 = arith.constant 0 : index
    %783 = vector.load %arg14[%c0_164, %c0_165] : memref<8x32xf32, #tpu.memory_space<vmem>>, vector<8x32xf32>
    tpu.vector_store %arg14[%c0_164, %c0_165], %779 {strides = array<i32>} : memref<8x32xf32, #tpu.memory_space<vmem>>, vector<8x32xf32>,
    %c0_i32_166 = arith.constant 0 : i32
    %784 = arith.cmpi eq, %arg0, %c0_i32_166 : i32
    %785 = arith.extui %784 : i1 to i32
    %c0_i32_167 = arith.constant 0 : i32
    %786 = arith.cmpi ne, %785, %c0_i32_167 : i32
    scf.if %786 {
      %c0_168 = arith.constant 0 : index
      %c0_169 = arith.constant 0 : index
      %787 = vector.load %arg7[%c0_168, %c0_169] : memref<8x32xf32, #tpu.memory_space<vmem>>, vector<8x32xf32>
      tpu.vector_store %arg7[%c0_168, %c0_169], %770 {strides = array<i32>} : memref<8x32xf32, #tpu.memory_space<vmem>>, vector<8x32xf32>,
      %c0_170 = arith.constant 0 : index
      %c0_171 = arith.constant 0 : index
      %788 = vector.load %arg8[%c0_170, %c0_171] : memref<8x32xf32, #tpu.memory_space<vmem>>, vector<8x32xf32>
      tpu.vector_store %arg8[%c0_170, %c0_171], %773 {strides = array<i32>} : memref<8x32xf32, #tpu.memory_space<vmem>>, vector<8x32xf32>,
      %c0_172 = arith.constant 0 : index
      %c0_173 = arith.constant 0 : index
      %789 = vector.load %arg9[%c0_172, %c0_173] : memref<8x32xf32, #tpu.memory_space<vmem>>, vector<8x32xf32>
      tpu.vector_store %arg9[%c0_172, %c0_173], %776 {strides = array<i32>} : memref<8x32xf32, #tpu.memory_space<vmem>>, vector<8x32xf32>,
      %c0_174 = arith.constant 0 : index
      %c0_175 = arith.constant 0 : index
      %790 = vector.load %arg10[%c0_174, %c0_175] : memref<8x32xf32, #tpu.memory_space<vmem>>, vector<8x32xf32>
      tpu.vector_store %arg10[%c0_174, %c0_175], %779 {strides = array<i32>} : memref<8x32xf32, #tpu.memory_space<vmem>>, vector<8x32xf32>,
    } else {
    }
    return
  }
  func.func @transform_0(%arg0: i32) -> (i32, i32, i32) {
    %c0_i32 = arith.constant 0 : i32
    %c0_i32_0 = arith.constant 0 : i32
    %c0_i32_1 = arith.constant 0 : i32
    return %arg0, %c0_i32, %c0_i32_0 : i32, i32, i32
  }
  func.func @transform_1(%arg0: i32) -> (i32, i32, i32) {
    %c0_i32 = arith.constant 0 : i32
    %0 = arith.subi %c0_i32, %arg0 : i32
    %c0_i32_0 = arith.constant 0 : i32
    %c0_i32_1 = arith.constant 0 : i32
    %c0_i32_2 = arith.constant 0 : i32
    return %0, %c0_i32_0, %c0_i32_1 : i32, i32, i32
  }
  func.func @transform_2(%arg0: i32) -> (i32, i32) {
    %c0_i32 = arith.constant 0 : i32
    %c0_i32_0 = arith.constant 0 : i32
    %c0_i32_1 = arith.constant 0 : i32
    return %c0_i32, %c0_i32_0 : i32, i32
  }
  func.func @transform_3(%arg0: i32) -> (i32, i32) {
    %c0_i32 = arith.constant 0 : i32
    %c0_i32_0 = arith.constant 0 : i32
    %c0_i32_1 = arith.constant 0 : i32
    return %c0_i32, %c0_i32_0 : i32, i32
  }
  func.func @transform_4(%arg0: i32) -> (i32, i32, i32) {
    %c0_i32 = arith.constant 0 : i32
    %c0_i32_0 = arith.constant 0 : i32
    %c0_i32_1 = arith.constant 0 : i32
    return %arg0, %c0_i32, %c0_i32_0 : i32, i32, i32
  }
  func.func @transform_5(%arg0: i32) -> (i32, i32, i32) {
    %c0_i32 = arith.constant 0 : i32
    %0 = arith.subi %c0_i32, %arg0 : i32
    %c0_i32_0 = arith.constant 0 : i32
    %c0_i32_1 = arith.constant 0 : i32
    %c0_i32_2 = arith.constant 0 : i32
    return %0, %c0_i32_0, %c0_i32_1 : i32, i32, i32
  }
  func.func @transform_6(%arg0: i32) -> (i32, i32) {
    %c0_i32 = arith.constant 0 : i32
    %c0_i32_0 = arith.constant 0 : i32
    %c0_i32_1 = arith.constant 0 : i32
    return %c0_i32, %c0_i32_0 : i32, i32
  }
  func.func @transform_7(%arg0: i32) -> (i32, i32) {
    %c0_i32 = arith.constant 0 : i32
    %c0_i32_0 = arith.constant 0 : i32
    %c0_i32_1 = arith.constant 0 : i32
    return %c0_i32, %c0_i32_0 : i32, i32
  }
  func.func @transform_8(%arg0: i32) -> (i32, i32) {
    %c0_i32 = arith.constant 0 : i32
    %c0_i32_0 = arith.constant 0 : i32
    %c0_i32_1 = arith.constant 0 : i32
    return %c0_i32, %c0_i32_0 : i32, i32
  }
  func.func @transform_9(%arg0: i32) -> (i32, i32) {
    %c0_i32 = arith.constant 0 : i32
    %c0_i32_0 = arith.constant 0 : i32
    %c0_i32_1 = arith.constant 0 : i32
    return %c0_i32, %c0_i32_0 : i32, i32
  }
}

</mosaic_0001>

<bundles_post_ra>
// kernel: tpu_custom_call.1
= control target key start
LH: loop header
LB: loop body
LE: loop exit
PB: predicated region body
PF: predicated region fallthrough
CT: control target
= control target key end

     0   :  { %15 = vsyncpa [#allocation7], 0  ;;  %s2886_s0 = inlined_call_operand.hbm [shape: f32[8,8,128], index: 0, kind: input, shape index: {}]   ;;  %s2887_s1 = inlined_call_operand.hbm [shape: f32[8,8,128], index: 1, kind: input, shape index: {}]   ;;  %s2888_s2 = inlined_call_operand.vmem [shape: s32[8,1], index: 2, kind: input, shape index: {}]   ;;  %s2889_s3 = inlined_call_operand.hbm [shape: f32[64,256], index: 3, kind: input, shape index: {}]   ;;  %s2890_s4 = inlined_call_operand.hbm [shape: f32[8,8,32], index: 4, kind: output, shape index: {0}]   ;;  %s2891_s5 = inlined_call_operand.hbm [shape: f32[8,8,32], index: 5, kind: output, shape index: {1}]   ;;  %s2892_s6 = inlined_call_operand.hbm [shape: f32[8,32], index: 6, kind: output, shape index: {2}]   ;;  %s2893_s7 = inlined_call_operand.hbm [shape: f32[8,32], index: 7, kind: output, shape index: {3}]   ;;  %s2894_s8 = inlined_call_operand.hbm [shape: f32[8,32], index: 8, kind: output, shape index: {4}]   ;;  %s2895_s9 = inlined_call_operand.hbm [shape: f32[8,32], index: 9, kind: output, shape index: {5}]  }
   0x1   :  { %16 = vsyncpa [#allocation10], 0 }
   0x2   :  { %17 = vsyncpa [#allocation8], 0 }
   0x3   :  { %18 = vsyncpa [#allocation14], 0 }
   0x4   :  { %19 = vsyncpa [#allocation17], 0 }
   0x5   :  { %20 = vsyncpa [#allocation20], 0  ;;  %s2099_s30 = smov [#allocation9]   ;;  %s2100_s11 = smov [#allocation6]  }
   0x6   :  { %s42_s10 = sshll.u32 %s2099_s30, 4  ;;  %s26_s12 = sshll.u32 %s2100_s11, 4  ;;  %s43_s10 = int_to_ptr.vmem [resolvable:$true] %s42_s10  ;;  %s27_s12 = int_to_ptr.vmem [resolvable:$true] %s26_s12 }
   0x7   :  { %s1915_s13 = scalar_lea.vmem %s43_s10, 1024  ;;  %p1920_p1 = scmp.lt.s32.totalorder %s43_s10, %s43_s10 }
   0x8   :  { %p1916_p0 = scmp.ne.s32.totalorder %s43_s10, %s1915_s13  ;;  %p1921_p2 = scmp.lt.s32.totalorder %s1915_s13, %s1915_s13 }
   0xa   :  { %p1922_p3 = por %p1921_p2, %p1920_p1 }
   0xc   :  { %p1923_p4 = pnand %p1922_p3, %p1916_p0 }
   0xe   :  { %1926 = shalt.err (!%p1923_p4)
}
   0xf   :  { %s2101_s14 = smov 128   ;;  %s2102_s15 = smov 8  }
  0x10   :  { %48 = dma.hbm_to_vmem [thread:$0]  %s2887_s1, 1024, %s43_s10, [#allocation10], %s2101_s14, %s2101_s14, %s2102_s15  }
  0x11   :  { %s1935_s18 = scalar_lea.vmem %s27_s12, 1024  ;;  %p1940_p6 = scmp.lt.s32.totalorder %s27_s12, %s27_s12 }
  0x12   :  { %p1936_p5 = scmp.ne.s32.totalorder %s27_s12, %s1935_s18  ;;  %p1941_p7 = scmp.lt.s32.totalorder %s1935_s18, %s1935_s18 }
  0x14   :  { %p1942_p8 = por %p1941_p7, %p1940_p6 }
  0x16   :  { %p1943_p9 = pnand %p1942_p8, %p1936_p5 }
  0x18   :  { %1946 = shalt.err (!%p1943_p9)
}
  0x19   :  { %32 = dma.hbm_to_vmem [thread:$0]  %s2886_s0, 1024, %s27_s12, [#allocation7], %s2101_s14, %s2101_s14, %s2102_s15  }
  0x1a   :  { %s2103_s21 = smov [#allocation11]  }
  0x1b   :  { %s56_s22 = sshll.u32 %s2103_s21, 4  ;;  %s57_s22 = int_to_ptr.vmem [resolvable:$true] %s56_s22 }
  0x1c   :  { %s1955_s23 = scalar_lea.vmem %s57_s22, 2048  ;;  %p1960_p11 = scmp.lt.s32.totalorder %s57_s22, %s57_s22 }
  0x1d   :  { %p1956_p10 = scmp.ne.s32.totalorder %s57_s22, %s1955_s23  ;;  %p1961_p12 = scmp.lt.s32.totalorder %s1955_s23, %s1955_s23 }
  0x1f   :  { %p1962_p13 = por %p1961_p12, %p1960_p11 }
  0x21   :  { %p1963_p0 = pnand %p1962_p13, %p1956_p10 }
  0x23   :  { %1966 = shalt.err (!%p1963_p0)
}
  0x24   :  { %s2104_s1 = smov 256   ;;  %s2105_s24 = smov 16  }
  0x25   :  { %62 = dma.hbm_to_vmem [thread:$0]  %s2889_s3, 2048, %s57_s22, [#allocation10], %s2104_s1, %s2104_s1, %s2105_s24  }
  0x26   :  { %2087 = dma.done.wait [#allocation7], 1024  }
  0x27   :  { %2088 = vsyncadd [#allocation7], 4294966272 }
  0x28   :  { %2089 = dma.done.wait [#allocation10], 3072  }
  0x29   :  { %2090 = vsyncadd [#allocation10], 4294964224  ;;  %vm80_vm0 = vcmask 261120   ;;  %v2106_v0 = vmov 0.0   ;;  %v2192_v1 = vld [vmem:[#allocation11 + $0x78] sm:$0xff]  ;;  %v2194_v2 = vld [vmem:[#allocation11 + $0x70] sm:$0xff] }
  0x2a   :  { %83 = vst.msk [vmem:[#allocation4] sm:$0xff] %vm80_vm0, %v2106_v0  ;;  %81 = vst.msk [vmem:[#allocation2] sm:$0xff] %vm80_vm0, %v2106_v0  ;;  %183 = vmatprep.mubr.f32.mxu0 %v2106_v0  ;;  %382 = vmatprep.mubr.f32.mxu1 %v2106_v0  ;;  %v2196_v3 = vld [vmem:[#allocation11 + $0x68] sm:$0xff]  ;;  %v2201_v5 = vld [vmem:[#allocation11 + $0x60] sm:$0xff]  ;;  %s2107_s0 = smov 32   ;;  %vm115_vm1 = vcmask 523264  }
  0x2b   :  { %82 = vst.msk [vmem:[#allocation3] sm:$0xff] %vm80_vm0, %v2106_v0  ;;  %84 = vst.msk [vmem:[#allocation5] sm:$0xff] %vm80_vm0, %v2106_v0  ;;  %135 = vmatprep.subr.mxu0 %v2192_v1  ;;  %334 = vmatprep.subr.mxu1 %v2192_v1  ;;  %v2207_v6 = vld [vmem:[#allocation11 + $0x58] sm:$0xff]  ;;  %v2210_v7 = vld [vmem:[#allocation11 + $0x50] sm:$0xff]  ;;  %v2108_v27 = vmov 0   ;;  %s2109_s3 = smov 64  }
  0x2c   :  { %136 = vmatpush1.msra.mxu0 %v2194_v2  ;;  %335 = vmatpush1.msra.mxu1 %v2194_v2  ;;  %v2214_v8 = vld [vmem:[#allocation11 + $0x48] sm:$0xff]  ;;  %v2218_v9 = vld [vmem:[#allocation11 + $0x40] sm:$0xff]  ;;  %v2222_v10 = vld [vmem:[#allocation11 + $0x38] sm:$0xff]  ;;  %s2111_s29 = smov [#allocation16]  }
  0x2d   :  { %137 = vmatprep.subr.mxu0 %v2196_v3  ;;  %336 = vmatprep.subr.mxu1 %v2196_v3  ;;  %v2226_v11 = vld [vmem:[#allocation11 + $0x30] sm:$0xff]  ;;  %v2230_v12 = vld [vmem:[#allocation11 + $0x28] sm:$0xff]  ;;  %v2234_v13 = vld [vmem:[#allocation11 + $0x20] sm:$0xff]  ;;  %s1667_s30 = sshll.u32 %s2111_s29, 4  ;;  %s1668_s30 = int_to_ptr.vmem [resolvable:$true] %s1667_s30 }
  0x2e   :  { %138 = vmatpush1.msra.mxu0 %v2201_v5  ;;  %337 = vmatpush1.msra.mxu1 %v2201_v5  ;;  %v2238_v14 = vld [vmem:[#allocation11 + $0x18] sm:$0xff]  ;;  %v2242_v15 = vld [vmem:[#allocation11 + $0x10] sm:$0xff]  ;;  %v2246_v16 = vld [vmem:[#allocation11 + $0x8] sm:$0xff]  ;;  %s1967_s10 = scalar_lea.vmem %s1668_s30, 128  ;;  %p1972_p2 = scmp.lt.s32.totalorder %s1668_s30, %s1668_s30 }
  0x2f   :  { %139 = vmatprep.subr.mxu0 %v2207_v6  ;;  %338 = vmatprep.subr.mxu1 %v2207_v6  ;;  %v2250_v17 = vld [vmem:[#allocation11] sm:$0xff]  ;;  %v193_v23 = vld [vmem:[#allocation9 + $0x38] sm:$0xff]  ;;  %p1968_p1 = scmp.ne.s32.totalorder %s1668_s30, %s1967_s10  ;;  %p1973_p3 = scmp.lt.s32.totalorder %s1967_s10, %s1967_s10 }
  0x30   :  { %140 = vmatpush1.msra.mxu0 %v2210_v7  ;;  %339 = vmatpush1.msra.mxu1 %v2210_v7  ;;  %v190_v21 = vld [vmem:[#allocation6] sm:$0xff] }
  0x31   :  { %v2198_v4 = vld [vmem:[#allocation4] sm:$0xff]  ;;  %141 = vmatprep.subr.mxu0 %v2214_v8  ;;  %340 = vmatprep.subr.mxu1 %v2214_v8  ;;  %v2262_v18 = vld [vmem:[#allocation2] sm:$0xff]  ;;  %p1974_p4 = por %p1973_p3, %p1972_p2 }
  0x32   :  { %94 = vrot.lane.b32.xlu0 %v2198_v4, %s2107_s0  ;;  %142 = vmatpush1.msra.mxu0 %v2218_v9  ;;  %v92_v29 = vld [vmem:[#allocation5] sm:$0xff]  ;;  %v90_v31 = vld [vmem:[#allocation3] sm:$0xff]  ;;  %v2293_v38 = vld [vmem:[%s2888_s2] sm:$0xff]  ;;  %s2110_s2 = smov 96  }
  0x33   :  { %143 = vmatprep.subr.mxu0 %v2222_v10  ;;  %341 = vmatpush1.msra.mxu1 %v2218_v9  ;;  %vm1720_vm2 = vcmp.gt.s32.totalorder %v2293_v38, 0  ;;  %vm1721_vm3 = vcmp.gt.s32.totalorder %v2293_v38, 7  ;;  %vm1725_vm6 = vcmp.gt.s32.totalorder %v2293_v38, 1  ;;  %vm1726_vm7 = vcmp.gt.s32.totalorder %v2293_v38, 6  ;;  %p1975_p5 = pnand %p1974_p4, %p1968_p1 }
  0x34   :  { %144 = vmatpush1.msra.mxu0 %v2226_v11  ;;  %342 = vmatprep.subr.mxu1 %v2222_v10  ;;  %v2298_v45 = vsel %vm1720_vm2, 1, %v2108_v27  ;;  %v2304_v46 = vsel %vm1721_vm3, 1, %v2108_v27  ;;  %vm1730_vm10 = vcmp.gt.s32.totalorder %v2293_v38, 2  ;;  %vm1731_vm11 = vcmp.gt.s32.totalorder %v2293_v38, 5 }
  0x35   :  { %145 = vmatprep.subr.mxu0 %v2230_v12  ;;  %343 = vmatpush1.msra.mxu1 %v2226_v11  ;;  %vm1735_vm14 = vcmp.gt.s32.totalorder %v2293_v38, 3  ;;  %vm1736_vm15 = vcmp.gt.s32.totalorder %v2293_v38, 4 }
  0x36   :  { %146 = vmatpush1.msra.mxu0 %v2234_v13  ;;  %344 = vmatprep.subr.mxu1 %v2230_v12 }
  0x37   :  { %147 = vmatprep.subr.mxu0 %v2238_v14  ;;  %345 = vmatpush1.msra.mxu1 %v2234_v13 }
  0x38   :  { %148 = vmatpush1.msra.mxu0 %v2242_v15  ;;  %346 = vmatprep.subr.mxu1 %v2238_v14 }
  0x39   :  { %149 = vmatprep.subr.mxu0 %v2246_v16  ;;  %347 = vmatpush1.msra.mxu1 %v2242_v15 }
  0x3a   :  { %150 = vmatpush1.msra.mxu0 %v2250_v17  ;;  %348 = vmatprep.subr.mxu1 %v2246_v16 }
  0x3b   :  { %349 = vmatpush1.msra.mxu1 %v2250_v17  ;;  %521 = vmatprep.subr.mxu0 %v2192_v1 }
  0x3c   :  { %708 = vmatprep.subr.mxu1 %v2192_v1  ;;  %1777 = vset.pattern.permute.xlu1 %v2108_v27 }
  0x3d   :  { %1778 = vset.pattern.permute.xlu0 %v2108_v27 }
  0xa4   :  { %v95_v19 = vpop.permute.xlu0 %94 }
  0xa5   :  { %v98_v20 = vsel %vm80_vm0, %v2262_v18, %v95_v19 }
  0xa6   :  { %1719 = vmatmul.mubr.msk.f32.vlgmr.msra.gmra.mxu0 %vm115_vm1, %v98_v20 }
  0xa7   :  { %522 = vmatpush1.msra.mxu0 %v2194_v2  ;;  %569 = vmatprep.mubr.f32.mxu0 %v2106_v0 }
  0xa8   :  { %523 = vmatprep.subr.mxu0 %v2196_v3 }
  0xa9   :  { %524 = vmatpush1.msra.mxu0 %v2201_v5 }
  0xaa   :  { %525 = vmatprep.subr.mxu0 %v2207_v6 }
  0xab   :  { %526 = vmatpush1.msra.mxu0 %v2210_v7 }
  0xac   :  { %527 = vmatprep.subr.mxu0 %v2214_v8 }
  0xad   :  { %528 = vmatpush1.msra.mxu0 %v2218_v9 }
  0xae   :  { %529 = vmatprep.subr.mxu0 %v2222_v10 }
  0xaf   :  { %530 = vmatpush1.msra.mxu0 %v2226_v11 }
  0xb0   :  { %531 = vmatprep.subr.mxu0 %v2230_v12 }
  0xb1   :  { %532 = vmatpush1.msra.mxu0 %v2234_v13 }
  0xb2   :  { %533 = vmatprep.subr.mxu0 %v2238_v14 }
  0xb3   :  { %534 = vmatpush1.msra.mxu0 %v2242_v15 }
  0xb4   :  { %535 = vmatprep.subr.mxu0 %v2246_v16 }
  0xb5   :  { %536 = vmatpush1.msra.mxu0 %v2250_v17 }
  0xb6   :  { %895 = vmatprep.subr.mxu0 %v2192_v1 }
 0x166   :  { %v185_v22 = vpop.f32.mrf.mxu0 }
 0x167   :  { %v191_v24 = vadd.f32 %v190_v21, %v185_v22 }
 0x168   :  { %v187_v25 = vpop.f32.mrf.mxu0 }
 0x169   :  { %1779 = vtanh.f32 %v191_v24  ;;  %v194_v26 = vadd.f32 %v193_v23, %v187_v25  ;;  %v1722_v32 = vmul.f32 -1.442695, %v191_v24  ;;  %v390_v23 = vld [vmem:[#allocation6 + $0x8] sm:$0xff]  ;;  %v393_v25 = vld [vmem:[#allocation9 + $0x30] sm:$0xff] }
 0x16b   :  { %1781 = vtanh.f32 %v194_v26  ;;  %v1723_v33 = vmul.f32 -1.442695, %v194_v26 }
 0x16c   :  { %1783 = vpow2.f32 %v1722_v32 }
 0x16d   :  { %1785 = vpow2.f32 %v1723_v33 }
 0x176   :  { %v1780_v28 = vpop.eup %1779 }
 0x177   :  { %213 = vrot.lane.b32.xlu0 %v1780_v28, %s2109_s3 }
 0x178   :  { %v1782_v30 = vpop.eup %1781 }
 0x179   :  { %241 = vrot.lane.b32.xlu1 %v1782_v30, %s2109_s3  ;;  %v1784_v34 = vpop.eup %1783 }
 0x17a   :  { %v1786_v35 = vpop.eup %1785  ;;  %v203_v36 = vadd.f32 1.0, %v1784_v34 }
 0x17b   :  { %236 = vrot.lane.b32.xlu0 %v92_v29, %s2107_s0  ;;  %v231_v37 = vadd.f32 1.0, %v1786_v35 }
 0x17c   :  { %1787 = vrcp.f32 %v203_v36 }
 0x17d   :  { %208 = vrot.lane.b32.xlu1 %v90_v31, %s2107_s0  ;;  %1789 = vrcp.f32 %v231_v37 }
 0x189   :  { %v1788_v39 = vpop.eup %1787 }
 0x18a   :  { %v1790_v42 = vpop.eup %1789 }
 0x1e9   :  { %v214_v40 = vpop.permute.xlu0 %213 }
 0x1ea   :  { %v216_v41 = vmul.f32 %v1788_v39, %v214_v40 }
 0x1eb   :  { %v242_v43 = vpop.permute.xlu1 %241 }
 0x1ec   :  { %218 = vrot.lane.b32.xlu1 %v216_v41, %s2107_s0  ;;  %v244_v44 = vmul.f32 %v1790_v42, %v242_v43 }
 0x1ed   :  { %v2311_v48 = vpop.permute.xlu0 %236 }
 0x1ee   :  { %246 = vrot.lane.b32.xlu0 %v244_v44, %s2107_s0  ;;  %v239_v52 = vmul.f32 %v1790_v42, %v2311_v48  ;;  %v2373_v44 = vsel %vm1725_vm6, 1, %v2108_v27 }
 0x1ef   :  { %v2309_v47 = vpop.permute.xlu1 %208 }
 0x1f0   :  { %258 = vperm.xlu1 %1777, %v2298_v45   ;;  %v211_v49 = vmul.f32 %v1788_v39, %v2309_v47 }
 0x1f2   :  { %269 = vperm.xlu0 %1778, %v2304_v46  }
 0x1f6   :  { %280 = vrot.lane.b32.xlu0 %v2262_v18, %s2110_s2 }
 0x25e   :  { %v219_v50 = vpop.permute.xlu1 %218 }
 0x25f   :  { %v2314_v51 = vadd.f32 %v219_v50, %v211_v49  ;;  %v2379_v49 = vsel %vm1726_vm7, 1, %v2108_v27 }
 0x260   :  { %v247_v53 = vpop.permute.xlu0 %246 }
 0x261   :  { %1791 = vtanh.f32 %v2314_v51  ;;  %v2318_v54 = vadd.f32 %v247_v53, %v239_v52 }
 0x263   :  { %1793 = vtanh.f32 %v2318_v54 }
 0x26b   :  { %v2325_v57 = vpop.permute.xlu1 %258 }
 0x26c   :  { %vm260_vm4 = vcmp.eq.s32.totalorder %v2325_v57, 1 }
 0x26d   :  { %v2327_v58 = vpop.permute.xlu0 %269  ;;  %v2386_v50 = vsel %vm260_vm4, %v2314_v51, %v2309_v47 }
 0x26e   :  { %v1792_v55 = vpop.eup %1791  ;;  %vm271_vm5 = vcmp.eq.s32.totalorder %v2327_v58, 1 }
 0x26f   :  { %224 = vrot.lane.b32.xlu1 %v1792_v55, %s2109_s3  ;;  %v2393_v55 = vsel %vm271_vm5, %v2318_v54, %v2311_v48 }
 0x270   :  { %v1794_v56 = vpop.eup %1793 }
 0x271   :  { %v281_v60 = vpop.permute.xlu0 %280 }
 0x273   :  { %252 = vrot.lane.b32.xlu1 %v1794_v56, %s2109_s3 }
 0x277   :  { %285 = vrot.lane.b32.xlu1 %v2198_v4, %s2110_s2 }
 0x2e1   :  { %v225_v59 = vpop.permute.xlu1 %224 }
 0x2e2   :  { %v2329_v61 = vmul.f32 %v1788_v39, %v225_v59 }
 0x2e4   :  { %v2335_v62 = vsel %vm260_vm4, %v2329_v61, %v281_v60 }
 0x2e5   :  { %291 = vrot.lane.b32.xlu0 %v2335_v62, %s2107_s0  ;;  %v253_v63 = vpop.permute.xlu1 %252 }
 0x2e6   :  { %v2339_v4 = vmul.f32 %v1790_v42, %v253_v63 }
 0x2e9   :  { %v286_v18 = vpop.permute.xlu1 %285 }
 0x2ea   :  { %v2345_v19 = vsel %vm271_vm5, %v2339_v4, %v286_v18 }
 0x2eb   :  { %295 = vrot.lane.b32.xlu1 %v2345_v19, %s2109_s3 }
 0x357   :  { %v292_v20 = vpop.permute.xlu0 %291 }
 0x35d   :  { %v296_v21 = vpop.permute.xlu1 %295 }
 0x35e   :  { %v298_v22 = vsel %vm80_vm0, %v292_v20, %v296_v21 }
 0x35f   :  { %1724 = vmatmul.mubr.msk.f32.vlgmr.msra.gmra.mxu1 %vm115_vm1, %v298_v22 }
 0x360   :  { %709 = vmatpush1.msra.mxu1 %v2194_v2  ;;  %756 = vmatprep.mubr.f32.mxu1 %v2106_v0 }
 0x361   :  { %710 = vmatprep.subr.mxu1 %v2196_v3 }
 0x362   :  { %711 = vmatpush1.msra.mxu1 %v2201_v5 }
 0x363   :  { %712 = vmatprep.subr.mxu1 %v2207_v6 }
 0x364   :  { %713 = vmatpush1.msra.mxu1 %v2210_v7 }
 0x365   :  { %714 = vmatprep.subr.mxu1 %v2214_v8 }
 0x366   :  { %715 = vmatpush1.msra.mxu1 %v2218_v9 }
 0x367   :  { %716 = vmatprep.subr.mxu1 %v2222_v10 }
 0x368   :  { %717 = vmatpush1.msra.mxu1 %v2226_v11 }
 0x369   :  { %718 = vmatprep.subr.mxu1 %v2230_v12 }
 0x36a   :  { %719 = vmatpush1.msra.mxu1 %v2234_v13 }
 0x36b   :  { %720 = vmatprep.subr.mxu1 %v2238_v14 }
 0x36c   :  { %721 = vmatpush1.msra.mxu1 %v2242_v15 }
 0x36d   :  { %722 = vmatprep.subr.mxu1 %v2246_v16 }
 0x36e   :  { %723 = vmatpush1.msra.mxu1 %v2250_v17 }
 0x36f   :  { %1082 = vmatprep.subr.mxu1 %v2192_v1 }
 0x41f   :  { %v384_v24 = vpop.f32.mrf.mxu1 }
 0x420   :  { %v391_v26 = vadd.f32 %v390_v23, %v384_v24 }
 0x421   :  { %v386_v28 = vpop.f32.mrf.mxu1 }
 0x422   :  { %1795 = vtanh.f32 %v391_v26  ;;  %v394_v29 = vadd.f32 %v393_v25, %v386_v28  ;;  %v1727_v32 = vmul.f32 -1.442695, %v391_v26 }
 0x424   :  { %1797 = vtanh.f32 %v394_v29  ;;  %v1728_v33 = vmul.f32 -1.442695, %v394_v29  ;;  %v580_v29 = vld [vmem:[#allocation9 + $0x28] sm:$0xff] }
 0x425   :  { %1799 = vpow2.f32 %v1727_v32 }
 0x426   :  { %1801 = vpow2.f32 %v1728_v33 }
 0x42f   :  { %v1796_v30 = vpop.eup %1795 }
 0x430   :  { %410 = vrot.lane.b32.xlu0 %v1796_v30, %s2109_s3 }
 0x431   :  { %v1798_v31 = vpop.eup %1797 }
 0x432   :  { %434 = vrot.lane.b32.xlu1 %v1798_v31, %s2109_s3  ;;  %v1800_v34 = vpop.eup %1799 }
 0x433   :  { %v1802_v1 = vpop.eup %1801  ;;  %v404_v35 = vadd.f32 1.0, %v1800_v34 }
 0x434   :  { %v428_v36 = vadd.f32 1.0, %v1802_v1 }
 0x435   :  { %1803 = vrcp.f32 %v404_v35 }
 0x436   :  { %1805 = vrcp.f32 %v428_v36 }
 0x442   :  { %v1804_v37 = vpop.eup %1803 }
 0x443   :  { %v1806_v41 = vpop.eup %1805  ;;  %v408_v52 = vmul.f32 %v1804_v37, %v2386_v50 }
 0x444   :  { %v432_v59 = vmul.f32 %v1806_v41, %v2393_v55 }
 0x4a2   :  { %v411_v39 = vpop.permute.xlu0 %410 }
 0x4a3   :  { %v413_v40 = vmul.f32 %v1804_v37, %v411_v39 }
 0x4a4   :  { %v435_v42 = vpop.permute.xlu1 %434 }
 0x4a5   :  { %415 = vrot.lane.b32.xlu0 %v413_v40, %s2107_s0  ;;  %v437_v43 = vmul.f32 %v1806_v41, %v435_v42 }
 0x4a7   :  { %439 = vrot.lane.b32.xlu1 %v437_v43, %s2107_s0 }
 0x4a9   :  { %451 = vperm.xlu0 %1778, %v2373_v44  }
 0x4ab   :  { %463 = vperm.xlu1 %1777, %v2379_v49  }
 0x517   :  { %v416_v53 = vpop.permute.xlu0 %415 }
 0x518   :  { %v2395_v56 = vadd.f32 %v416_v53, %v408_v52 }
 0x519   :  { %v440_v60 = vpop.permute.xlu1 %439 }
 0x51a   :  { %1807 = vtanh.f32 %v2395_v56  ;;  %v2399_v63 = vadd.f32 %v440_v60, %v432_v59  ;;  %v2453_v60 = vsel %vm1730_vm10, 1, %v2108_v27 }
 0x51c   :  { %1809 = vtanh.f32 %v2399_v63 }
 0x524   :  { %v2404_v18 = vpop.permute.xlu0 %451 }
 0x525   :  { %vm453_vm8 = vcmp.eq.s32.totalorder %v2404_v18, 1 }
 0x526   :  { %v2406_v48 = vpop.permute.xlu1 %463 }
 0x527   :  { %v1808_v47 = vpop.eup %1807  ;;  %vm465_vm9 = vcmp.eq.s32.totalorder %v2406_v48, 1 }
 0x528   :  { %421 = vrot.lane.b32.xlu0 %v1808_v47, %s2109_s3  ;;  %v2459_v47 = vsel %vm1731_vm11, 1, %v2108_v27 }
 0x529   :  { %v1810_v51 = vpop.eup %1809 }
 0x52a   :  { %445 = vrot.lane.b32.xlu1 %v1810_v51, %s2109_s3  ;;  %v2466_v51 = vsel %vm453_vm8, %v2395_v56, %v2386_v50 }
 0x59a   :  { %v422_v54 = vpop.permute.xlu0 %421 }
 0x59b   :  { %v2408_v20 = vmul.f32 %v1804_v37, %v422_v54 }
 0x59c   :  { %v446_v21 = vpop.permute.xlu1 %445 }
 0x59d   :  { %v2415_v22 = vsel %vm453_vm8, %v2408_v20, %v2335_v62  ;;  %v2417_v23 = vmul.f32 %v1806_v41, %v446_v21 }
 0x59e   :  { %478 = vrot.lane.b32.xlu0 %v2415_v22, %s2107_s0 }
 0x59f   :  { %v2426_v24 = vsel %vm465_vm9, %v2417_v23, %v2345_v19  ;;  %v577_v19 = vld [vmem:[#allocation6 + $0x10] sm:$0xff] }
 0x5a0   :  { %482 = vrot.lane.b32.xlu1 %v2426_v24, %s2109_s3 }
 0x610   :  { %v479_v25 = vpop.permute.xlu0 %478 }
 0x612   :  { %v483_v26 = vpop.permute.xlu1 %482 }
 0x613   :  { %v485_v62 = vsel %vm80_vm0, %v479_v25, %v483_v26  ;;  %v2473_v25 = vsel %vm465_vm9, %v2399_v63, %v2393_v55 }
 0x614   :  { %1729 = vmatmul.mubr.msk.f32.vlgmr.msra.gmra.mxu0 %vm115_vm1, %v485_v62 }
 0x615   :  { %896 = vmatpush1.msra.mxu0 %v2194_v2  ;;  %943 = vmatprep.mubr.f32.mxu0 %v2106_v0 }
 0x616   :  { %897 = vmatprep.subr.mxu0 %v2196_v3 }
 0x617   :  { %898 = vmatpush1.msra.mxu0 %v2201_v5 }
 0x618   :  { %899 = vmatprep.subr.mxu0 %v2207_v6 }
 0x619   :  { %900 = vmatpush1.msra.mxu0 %v2210_v7 }
 0x61a   :  { %901 = vmatprep.subr.mxu0 %v2214_v8 }
 0x61b   :  { %902 = vmatpush1.msra.mxu0 %v2218_v9 }
 0x61c   :  { %903 = vmatprep.subr.mxu0 %v2222_v10 }
 0x61d   :  { %904 = vmatpush1.msra.mxu0 %v2226_v11 }
 0x61e   :  { %905 = vmatprep.subr.mxu0 %v2230_v12 }
 0x61f   :  { %906 = vmatpush1.msra.mxu0 %v2234_v13 }
 0x620   :  { %907 = vmatprep.subr.mxu0 %v2238_v14 }
 0x621   :  { %908 = vmatpush1.msra.mxu0 %v2242_v15 }
 0x622   :  { %909 = vmatprep.subr.mxu0 %v2246_v16 }
 0x623   :  { %910 = vmatpush1.msra.mxu0 %v2250_v17 }
 0x6d4   :  { %v571_v28 = vpop.f32.mrf.mxu0 }
 0x6d5   :  { %v578_v30 = vadd.f32 %v577_v19, %v571_v28 }
 0x6d6   :  { %v573_v31 = vpop.f32.mrf.mxu0 }
 0x6d7   :  { %1811 = vtanh.f32 %v578_v30  ;;  %v581_v32 = vadd.f32 %v580_v29, %v573_v31  ;;  %v1732_v1 = vmul.f32 -1.442695, %v578_v30 }
 0x6d9   :  { %1813 = vtanh.f32 %v581_v32  ;;  %v1733_v35 = vmul.f32 -1.442695, %v581_v32 }
 0x6da   :  { %1815 = vpow2.f32 %v1732_v1 }
 0x6db   :  { %1817 = vpow2.f32 %v1733_v35 }
 0x6e4   :  { %v1812_v33 = vpop.eup %1811 }
 0x6e5   :  { %597 = vrot.lane.b32.xlu0 %v1812_v33, %s2109_s3 }
 0x6e6   :  { %v1814_v34 = vpop.eup %1813 }
 0x6e7   :  { %621 = vrot.lane.b32.xlu1 %v1814_v34, %s2109_s3  ;;  %v1816_v36 = vpop.eup %1815 }
 0x6e8   :  { %v1818_v37 = vpop.eup %1817  ;;  %v591_v39 = vadd.f32 1.0, %v1816_v36 }
 0x6e9   :  { %v615_v40 = vadd.f32 1.0, %v1818_v37 }
 0x6ea   :  { %1819 = vrcp.f32 %v591_v39 }
 0x6eb   :  { %1821 = vrcp.f32 %v615_v40 }
 0x6f7   :  { %v1820_v41 = vpop.eup %1819 }
 0x6f8   :  { %v1822_v52 = vpop.eup %1821  ;;  %v595_v54 = vmul.f32 %v1820_v41, %v2466_v51 }
 0x6f9   :  { %v619_v62 = vmul.f32 %v1822_v52, %v2473_v25 }
 0x757   :  { %v598_v42 = vpop.permute.xlu0 %597 }
 0x758   :  { %v600_v43 = vmul.f32 %v1820_v41, %v598_v42  ;;  %v835_v42 = vsel %vm1736_vm15, 1, %v2108_v27 }
 0x759   :  { %v622_v53 = vpop.permute.xlu1 %621 }
 0x75a   :  { %602 = vrot.lane.b32.xlu0 %v600_v43, %s2107_s0  ;;  %v624_v59 = vmul.f32 %v1822_v52, %v622_v53 }
 0x75c   :  { %626 = vrot.lane.b32.xlu1 %v624_v59, %s2107_s0 }
 0x75e   :  { %638 = vperm.xlu0 %1778, %v2453_v60  }
 0x760   :  { %650 = vperm.xlu1 %1777, %v2459_v47  }
 0x7cc   :  { %v603_v21 = vpop.permute.xlu0 %602 }
 0x7cd   :  { %v2475_v26 = vadd.f32 %v603_v21, %v595_v54 }
 0x7ce   :  { %v627_v19 = vpop.permute.xlu1 %626 }
 0x7cf   :  { %1823 = vtanh.f32 %v2475_v26  ;;  %v2479_v28 = vadd.f32 %v627_v19, %v619_v62 }
 0x7d1   :  { %1825 = vtanh.f32 %v2479_v28 }
 0x7d9   :  { %v2484_v29 = vpop.permute.xlu0 %638 }
 0x7da   :  { %vm640_vm12 = vcmp.eq.s32.totalorder %v2484_v29, 1 }
 0x7db   :  { %v2486_v55 = vpop.permute.xlu1 %650  ;;  %v2543_v43 = vsel %vm640_vm12, %v2475_v26, %v2466_v51 }
 0x7dc   :  { %v1824_v50 = vpop.eup %1823  ;;  %vm652_vm13 = vcmp.eq.s32.totalorder %v2486_v55, 1 }
 0x7dd   :  { %608 = vrot.lane.b32.xlu0 %v1824_v50, %s2109_s3  ;;  %v2550_v38 = vsel %vm652_vm13, %v2479_v28, %v2473_v25 }
 0x7de   :  { %v1826_v56 = vpop.eup %1825 }
 0x7df   :  { %632 = vrot.lane.b32.xlu1 %v1826_v56, %s2109_s3 }
 0x84f   :  { %v609_v63 = vpop.permute.xlu0 %608 }
 0x850   :  { %v2488_v30 = vmul.f32 %v1820_v41, %v609_v63  ;;  %v2533_v41 = vsel %vm1735_vm14, 1, %v2108_v27 }
 0x851   :  { %v633_v31 = vpop.permute.xlu1 %632 }
 0x852   :  { %v2495_v32 = vsel %vm640_vm12, %v2488_v30, %v2415_v22  ;;  %v2497_v33 = vmul.f32 %v1822_v52, %v633_v31 }
 0x853   :  { %665 = vrot.lane.b32.xlu0 %v2495_v32, %s2107_s0 }
 0x854   :  { %v2506_v34 = vsel %vm652_vm13, %v2497_v33, %v2426_v24 }
 0x855   :  { %669 = vrot.lane.b32.xlu1 %v2506_v34, %s2109_s3 }
 0x8c5   :  { %v666_v1 = vpop.permute.xlu0 %665 }
 0x8c7   :  { %v670_v35 = vpop.permute.xlu1 %669 }
 0x8c8   :  { %v672_v22 = vsel %vm80_vm0, %v666_v1, %v670_v35 }
 0x8c9   :  { %1734 = vmatmul.mubr.msk.f32.vlgmr.msra.gmra.mxu1 %vm115_vm1, %v672_v22  ;;  %v951_v22 = vld [vmem:[#allocation6 + $0x20] sm:$0xff] }
 0x8ca   :  { %1083 = vmatpush1.msra.mxu1 %v2194_v2  ;;  %1130 = vmatprep.mubr.f32.mxu1 %v2106_v0  ;;  %v764_v2 = vld [vmem:[#allocation6 + $0x18] sm:$0xff] }
 0x8cb   :  { %1084 = vmatprep.subr.mxu1 %v2196_v3 }
 0x8cc   :  { %1085 = vmatpush1.msra.mxu1 %v2201_v5  ;;  %v767_v5 = vld [vmem:[#allocation9 + $0x20] sm:$0xff] }
 0x8cd   :  { %1086 = vmatprep.subr.mxu1 %v2207_v6 }
 0x8ce   :  { %1087 = vmatpush1.msra.mxu1 %v2210_v7 }
 0x8cf   :  { %1088 = vmatprep.subr.mxu1 %v2214_v8 }
 0x8d0   :  { %1089 = vmatpush1.msra.mxu1 %v2218_v9 }
 0x8d1   :  { %1090 = vmatprep.subr.mxu1 %v2222_v10 }
 0x8d2   :  { %1091 = vmatpush1.msra.mxu1 %v2226_v11 }
 0x8d3   :  { %1092 = vmatprep.subr.mxu1 %v2230_v12 }
 0x8d4   :  { %1093 = vmatpush1.msra.mxu1 %v2234_v13 }
 0x8d5   :  { %1094 = vmatprep.subr.mxu1 %v2238_v14 }
 0x8d6   :  { %1095 = vmatpush1.msra.mxu1 %v2242_v15 }
 0x8d7   :  { %1096 = vmatprep.subr.mxu1 %v2246_v16 }
 0x8d8   :  { %1097 = vmatpush1.msra.mxu1 %v2250_v17 }
 0x989   :  { %v758_v3 = vpop.f32.mrf.mxu1 }
 0x98a   :  { %v765_v6 = vadd.f32 %v764_v2, %v758_v3  ;;  %v954_v3 = vld [vmem:[#allocation9 + $0x18] sm:$0xff] }
 0x98b   :  { %v760_v7 = vpop.f32.mrf.mxu1 }
 0x98c   :  { %1827 = vtanh.f32 %v765_v6  ;;  %v768_v8 = vadd.f32 %v767_v5, %v760_v7  ;;  %v1737_v11 = vmul.f32 -1.442695, %v765_v6 }
 0x98e   :  { %1829 = vtanh.f32 %v768_v8  ;;  %v1738_v12 = vmul.f32 -1.442695, %v768_v8 }
 0x98f   :  { %1831 = vpow2.f32 %v1737_v11 }
 0x990   :  { %1833 = vpow2.f32 %v1738_v12 }
 0x999   :  { %v1828_v9 = vpop.eup %1827 }
 0x99a   :  { %784 = vrot.lane.b32.xlu0 %v1828_v9, %s2109_s3 }
 0x99b   :  { %v1830_v10 = vpop.eup %1829 }
 0x99c   :  { %808 = vrot.lane.b32.xlu1 %v1830_v10, %s2109_s3  ;;  %v1832_v13 = vpop.eup %1831 }
 0x99d   :  { %v1834_v14 = vpop.eup %1833  ;;  %v778_v15 = vadd.f32 1.0, %v1832_v13 }
 0x99e   :  { %v802_v16 = vadd.f32 1.0, %v1834_v14 }
 0x99f   :  { %1835 = vrcp.f32 %v778_v15 }
 0x9a0   :  { %1837 = vrcp.f32 %v802_v16 }
 0x9ac   :  { %v1836_v17 = vpop.eup %1835 }
 0x9ad   :  { %v1838_v37 = vpop.eup %1837  ;;  %v782_v52 = vmul.f32 %v1836_v17, %v2543_v43 }
 0x9ae   :  { %v806_v54 = vmul.f32 %v1838_v37, %v2550_v38 }
 0xa0c   :  { %v785_v24 = vpop.permute.xlu0 %784 }
 0xa0d   :  { %v787_v36 = vmul.f32 %v1836_v17, %v785_v24 }
 0xa0e   :  { %v809_v39 = vpop.permute.xlu1 %808 }
 0xa0f   :  { %789 = vrot.lane.b32.xlu0 %v787_v36, %s2107_s0  ;;  %v811_v40 = vmul.f32 %v1838_v37, %v809_v39 }
 0xa11   :  { %813 = vrot.lane.b32.xlu1 %v811_v40, %s2107_s0 }
 0xa13   :  { %825 = vperm.xlu0 %1778, %v2533_v41  }
 0xa15   :  { %837 = vperm.xlu1 %1777, %v835_v42  }
 0xa81   :  { %v790_v53 = vpop.permute.xlu0 %789 }
 0xa82   :  { %v792_v59 = vadd.f32 %v790_v53, %v782_v52 }
 0xa83   :  { %v814_v27 = vpop.permute.xlu1 %813 }
 0xa84   :  { %1839 = vtanh.f32 %v792_v59  ;;  %v816_v21 = vadd.f32 %v814_v27, %v806_v54 }
 0xa86   :  { %1841 = vtanh.f32 %v816_v21 }
 0xa8e   :  { %v2555_v26 = vpop.permute.xlu0 %825 }
 0xa8f   :  { %vm827_vm2 = vcmp.eq.s32.totalorder %v2555_v26, 1 }
 0xa90   :  { %v2557_v19 = vpop.permute.xlu1 %837  ;;  %v2592_v39 = vsel %vm827_vm2, %v792_v59, %v2543_v43 }
 0xa91   :  { %v1840_v62 = vpop.eup %1839  ;;  %vm839_vm3 = vcmp.eq.s32.totalorder %v2557_v19, 1 }
 0xa92   :  { %795 = vrot.lane.b32.xlu0 %v1840_v62, %s2109_s3  ;;  %v2598_v53 = vsel %vm839_vm3, %v816_v21, %v2550_v38 }
 0xa93   :  { %v1842_v51 = vpop.eup %1841 }
 0xa94   :  { %819 = vrot.lane.b32.xlu1 %v1842_v51, %s2109_s3 }
 0xb04   :  { %v796_v50 = vpop.permute.xlu0 %795 }
 0xb05   :  { %v2559_v25 = vmul.f32 %v1836_v17, %v796_v50 }
 0xb06   :  { %v820_v28 = vpop.permute.xlu1 %819 }
 0xb07   :  { %v2566_v56 = vsel %vm827_vm2, %v2559_v25, %v2495_v32  ;;  %v2568_v63 = vmul.f32 %v1838_v37, %v820_v28 }
 0xb08   :  { %852 = vrot.lane.b32.xlu0 %v2566_v56, %s2107_s0 }
 0xb09   :  { %v2577_v31 = vsel %vm839_vm3, %v2568_v63, %v2506_v34 }
 0xb0a   :  { %856 = vrot.lane.b32.xlu1 %v2577_v31, %s2109_s3 }
 0xb7a   :  { %v853_v1 = vpop.permute.xlu0 %852 }
 0xb7c   :  { %v857_v35 = vpop.permute.xlu1 %856 }
 0xb7d   :  { %v859_v32 = vsel %vm80_vm0, %v853_v1, %v857_v35 }
 0xb7e   :  { %1739 = vmatmul.mubr.msk.f32.vlgmr.msra.gmra.mxu0 %vm115_vm1, %v859_v32 }
 0xb7f   :  { %1317 = vmatprep.mubr.f32.mxu0 %v2106_v0 }
 0xc3e   :  { %v945_v2 = vpop.f32.mrf.mxu0 }
 0xc3f   :  { %v952_v5 = vadd.f32 %v951_v22, %v945_v2  ;;  %v1138_v2 = vld [vmem:[#allocation6 + $0x28] sm:$0xff] }
 0xc40   :  { %v947_v6 = vpop.f32.mrf.mxu0 }
 0xc41   :  { %1843 = vtanh.f32 %v952_v5  ;;  %v955_v7 = vadd.f32 %v954_v3, %v947_v6  ;;  %v1742_v9 = vmul.f32 -1.442695, %v952_v5  ;;  %v1141_v5 = vld [vmem:[#allocation9 + $0x10] sm:$0xff] }
 0xc43   :  { %1845 = vtanh.f32 %v955_v7  ;;  %v1743_v10 = vmul.f32 -1.442695, %v955_v7 }
 0xc44   :  { %1847 = vpow2.f32 %v1742_v9 }
 0xc45   :  { %1849 = vpow2.f32 %v1743_v10 }
 0xc4e   :  { %v1844_v34 = vpop.eup %1843 }
 0xc4f   :  { %971 = vrot.lane.b32.xlu0 %v1844_v34, %s2109_s3 }
 0xc50   :  { %v1846_v8 = vpop.eup %1845 }
 0xc51   :  { %995 = vrot.lane.b32.xlu1 %v1846_v8, %s2109_s3  ;;  %v1848_v11 = vpop.eup %1847 }
 0xc52   :  { %v1850_v12 = vpop.eup %1849  ;;  %v965_v13 = vadd.f32 1.0, %v1848_v11 }
 0xc53   :  { %v989_v14 = vadd.f32 1.0, %v1850_v12 }
 0xc54   :  { %1851 = vrcp.f32 %v965_v13 }
 0xc55   :  { %1853 = vrcp.f32 %v989_v14 }
 0xc61   :  { %v1852_v15 = vpop.eup %1851 }
 0xc62   :  { %v1854_v24 = vpop.eup %1853  ;;  %v969_v40 = vmul.f32 %v1852_v15, %v2592_v39 }
 0xc63   :  { %v993_v27 = vmul.f32 %v1854_v24, %v2598_v53 }
 0xcc1   :  { %v972_v16 = vpop.permute.xlu0 %971 }
 0xcc2   :  { %v974_v17 = vmul.f32 %v1852_v15, %v972_v16 }
 0xcc3   :  { %v996_v36 = vpop.permute.xlu1 %995 }
 0xcc4   :  { %976 = vrot.lane.b32.xlu0 %v974_v17, %s2107_s0  ;;  %v998_v37 = vmul.f32 %v1854_v24, %v996_v36 }
 0xcc6   :  { %1000 = vrot.lane.b32.xlu1 %v998_v37, %s2107_s0 }
 0xcc8   :  { %1012 = vperm.xlu0 %1778, %v835_v42  }
 0xcca   :  { %1024 = vperm.xlu1 %1777, %v2533_v41  }
 0xd36   :  { %v977_v52 = vpop.permute.xlu0 %976 }
 0xd37   :  { %v979_v54 = vadd.f32 %v977_v52, %v969_v40 }
 0xd38   :  { %v1001_v42 = vpop.permute.xlu1 %1000 }
 0xd39   :  { %1855 = vtanh.f32 %v979_v54  ;;  %v1003_v62 = vadd.f32 %v1001_v42, %v993_v27 }
 0xd3b   :  { %1857 = vtanh.f32 %v1003_v62 }
 0xd43   :  { %v2603_v59 = vpop.permute.xlu0 %1012 }
 0xd44   :  { %vm1014_vm6 = vcmp.eq.s32.totalorder %v2603_v59, 1 }
 0xd45   :  { %v2605_v51 = vpop.permute.xlu1 %1024  ;;  %v2647_v37 = vsel %vm1014_vm6, %v979_v54, %v2592_v39  ;;  %v1249_v39 = vld [vmem:[#allocation11 + $0x78] sm:$0xff]  ;;  %v1248_v54 = vld [vmem:[#allocation11 + $0x70] sm:$0xff] }
 0xd46   :  { %v1856_v41 = vpop.eup %1855  ;;  %vm1026_vm7 = vcmp.eq.s32.totalorder %v2605_v51, 1  ;;  %1269 = vmatprep.subr.mxu0 %v1249_v39  ;;  %1456 = vmatprep.subr.mxu1 %v1249_v39 }
 0xd47   :  { %982 = vrot.lane.b32.xlu0 %v1856_v41, %s2109_s3  ;;  %v2654_v27 = vsel %vm1026_vm7, %v1003_v62, %v2598_v53  ;;  %1270 = vmatpush1.msra.mxu0 %v1248_v54  ;;  %v1245_v53 = vld [vmem:[#allocation11 + $0x58] sm:$0xff]  ;;  %v1244_v62 = vld [vmem:[#allocation11 + $0x50] sm:$0xff] }
 0xd48   :  { %v1858_v43 = vpop.eup %1857 }
 0xd49   :  { %1006 = vrot.lane.b32.xlu1 %v1858_v43, %s2109_s3  ;;  %v1247_v43 = vld [vmem:[#allocation11 + $0x68] sm:$0xff] }
 0xd4a   :  { %1271 = vmatprep.subr.mxu0 %v1247_v43 }
 0xdb9   :  { %v983_v50 = vpop.permute.xlu0 %982 }
 0xdba   :  { %v2607_v38 = vmul.f32 %v1852_v15, %v983_v50  ;;  %v1246_v50 = vld [vmem:[#allocation11 + $0x60] sm:$0xff] }
 0xdbb   :  { %v1007_v21 = vpop.permute.xlu1 %1006  ;;  %1272 = vmatpush1.msra.mxu0 %v1246_v50 }
 0xdbc   :  { %v2614_v28 = vsel %vm1014_vm6, %v2607_v38, %v2566_v56  ;;  %v2616_v1 = vmul.f32 %v1854_v24, %v1007_v21  ;;  %v1243_v21 = vld [vmem:[#allocation11 + $0x48] sm:$0xff]  ;;  %1273 = vmatprep.subr.mxu0 %v1245_v53  ;;  %v1015_v57 = vsel %vm1014_vm6, %v2607_v38, -1.0 }
 0xdbd   :  { %1039 = vrot.lane.b32.xlu0 %v2614_v28, %s2107_s0  ;;  %1274 = vmatpush1.msra.mxu0 %v1244_v62 }
 0xdbe   :  { %v2625_v35 = vsel %vm1026_vm7, %v2616_v1, %v2577_v31  ;;  %1275 = vmatprep.subr.mxu0 %v1243_v21  ;;  %v1027_v58 = vsel %vm1026_vm7, %v2616_v1, -1.0 }
 0xdbf   :  { %1043 = vrot.lane.b32.xlu1 %v2625_v35, %s2109_s3 }
 0xe2f   :  { %v1040_v32 = vpop.permute.xlu0 %1039 }
 0xe31   :  { %v1044_v22 = vpop.permute.xlu1 %1043 }
 0xe32   :  { %v1046_v56 = vsel %vm80_vm0, %v1040_v32, %v1044_v22  ;;  %v1242_v32 = vld [vmem:[#allocation11 + $0x40] sm:$0xff] }
 0xe33   :  { %1744 = vmatmul.mubr.msk.f32.vlgmr.msra.gmra.mxu1 %vm115_vm1, %v1046_v56  ;;  %v1241_v56 = vld [vmem:[#allocation11 + $0x38] sm:$0xff]  ;;  %1276 = vmatpush1.msra.mxu0 %v1242_v32 }
 0xe34   :  { %1504 = vmatprep.mubr.f32.mxu1 %v2106_v0  ;;  %1457 = vmatpush1.msra.mxu1 %v1248_v54 }
 0xe35   :  { %1458 = vmatprep.subr.mxu1 %v1247_v43  ;;  %1277 = vmatprep.subr.mxu0 %v1241_v56 }
 0xe36   :  { %1459 = vmatpush1.msra.mxu1 %v1246_v50 }
 0xe37   :  { %1460 = vmatprep.subr.mxu1 %v1245_v53 }
 0xe38   :  { %1461 = vmatpush1.msra.mxu1 %v1244_v62 }
 0xe39   :  { %1462 = vmatprep.subr.mxu1 %v1243_v21 }
 0xe3a   :  { %1463 = vmatpush1.msra.mxu1 %v1242_v32 }
 0xe3b   :  { %1464 = vmatprep.subr.mxu1 %v1241_v56 }
 0xef3   :  { %v1132_v3 = vpop.f32.mrf.mxu1 }
 0xef4   :  { %v1139_v6 = vadd.f32 %v1138_v2, %v1132_v3  ;;  %v1240_v2 = vld [vmem:[#allocation11 + $0x30] sm:$0xff]  ;;  %v1239_v3 = vld [vmem:[#allocation11 + $0x28] sm:$0xff] }
 0xef5   :  { %v1134_v7 = vpop.f32.mrf.mxu1  ;;  %1278 = vmatpush1.msra.mxu0 %v1240_v2  ;;  %1465 = vmatpush1.msra.mxu1 %v1240_v2 }
 0xef6   :  { %1859 = vtanh.f32 %v1139_v6  ;;  %v1142_v34 = vadd.f32 %v1141_v5, %v1134_v7  ;;  %v1747_v9 = vmul.f32 -1.442695, %v1139_v6  ;;  %v1238_v6 = vld [vmem:[#allocation11 + $0x20] sm:$0xff]  ;;  %v1237_v7 = vld [vmem:[#allocation11 + $0x18] sm:$0xff]  ;;  %1279 = vmatprep.subr.mxu0 %v1239_v3  ;;  %1466 = vmatprep.subr.mxu1 %v1239_v3 }
 0xef7   :  { %1280 = vmatpush1.msra.mxu0 %v1238_v6  ;;  %1467 = vmatpush1.msra.mxu1 %v1238_v6 }
 0xef8   :  { %1861 = vtanh.f32 %v1142_v34  ;;  %v1748_v10 = vmul.f32 -1.442695, %v1142_v34  ;;  %1281 = vmatprep.subr.mxu0 %v1237_v7  ;;  %1468 = vmatprep.subr.mxu1 %v1237_v7  ;;  %v1236_v34 = vld [vmem:[#allocation11 + $0x10] sm:$0xff] }
 0xef9   :  { %1863 = vpow2.f32 %v1747_v9  ;;  %1282 = vmatpush1.msra.mxu0 %v1236_v34  ;;  %1469 = vmatpush1.msra.mxu1 %v1236_v34 }
 0xefa   :  { %1865 = vpow2.f32 %v1748_v10 }
 0xf03   :  { %v1860_v31 = vpop.eup %1859 }
 0xf04   :  { %1158 = vrot.lane.b32.xlu0 %v1860_v31, %s2109_s3  ;;  %v1235_v31 = vld [vmem:[#allocation11 + $0x8] sm:$0xff] }
 0xf05   :  { %v1862_v8 = vpop.eup %1861  ;;  %1283 = vmatprep.subr.mxu0 %v1235_v31  ;;  %1470 = vmatprep.subr.mxu1 %v1235_v31 }
 0xf06   :  { %1182 = vrot.lane.b32.xlu1 %v1862_v8, %s2109_s3  ;;  %v1864_v11 = vpop.eup %1863  ;;  %v1234_v8 = vld [vmem:[#allocation11] sm:$0xff] }
 0xf07   :  { %v1866_v0 = vpop.eup %1865  ;;  %v1152_v12 = vadd.f32 1.0, %v1864_v11  ;;  %1284 = vmatpush1.msra.mxu0 %v1234_v8  ;;  %1471 = vmatpush1.msra.mxu1 %v1234_v8 }
 0xf08   :  { %v1176_v13 = vadd.f32 1.0, %v1866_v0 }
 0xf09   :  { %1867 = vrcp.f32 %v1152_v12 }
 0xf0a   :  { %1869 = vrcp.f32 %v1176_v13 }
 0xf16   :  { %v2634_v14 = vpop.eup %1867 }
 0xf17   :  { %v2637_v17 = vpop.eup %1869  ;;  %v1156_v40 = vmul.f32 %v2634_v14, %v2647_v37 }
 0xf76   :  { %v1159_v15 = vpop.permute.xlu0 %1158 }
 0xf77   :  { %v1161_v16 = vmul.f32 %v2634_v14, %v1159_v15 }
 0xf78   :  { %v1183_v24 = vpop.permute.xlu1 %1182 }
 0xf79   :  { %1163 = vrot.lane.b32.xlu0 %v1161_v16, %s2107_s0  ;;  %v1185_v36 = vmul.f32 %v2637_v17, %v1183_v24 }
 0xf7b   :  { %1187 = vrot.lane.b32.xlu1 %v1185_v36, %s2107_s0 }
 0xf7d   :  { %1199 = vperm.xlu0 %1778, %v2459_v47   ;;  %v1180_v47 = vmul.f32 %v2637_v17, %v2654_v27 }
 0xf7f   :  { %1211 = vperm.xlu1 %1777, %v2453_v60  }
 0xfeb   :  { %v1164_v52 = vpop.permute.xlu0 %1163 }
 0xfec   :  { %v2656_v42 = vadd.f32 %v1164_v52, %v1156_v40  ;;  %v1328_v40 = vld [vmem:[#allocation9 + $0x8] sm:$0xff] }
 0xfed   :  { %v1188_v60 = vpop.permute.xlu1 %1187 }
 0xfee   :  { %1871 = vtanh.f32 %v2656_v42  ;;  %v2661_v41 = vadd.f32 %v1188_v60, %v1180_v47 }
 0xff0   :  { %1873 = vtanh.f32 %v2661_v41 }
 0xff8   :  { %v2666_v9 = vpop.permute.xlu0 %1199 }
 0xff9   :  { %vm1201_vm10 = vcmp.eq.s32.totalorder %v2666_v9, 1 }
 0xffa   :  { %v2668_v10 = vpop.permute.xlu1 %1211  ;;  %v2706_v6 = vsel %vm1201_vm10, %v2656_v42, %v2647_v37 }
 0xffb   :  { %v1872_v22 = vpop.eup %1871  ;;  %vm1213_vm11 = vcmp.eq.s32.totalorder %v2668_v10, 1 }
 0xffc   :  { %1169 = vrot.lane.b32.xlu0 %v1872_v22, %s2109_s3  ;;  %v2713_v31 = vsel %vm1213_vm11, %v2661_v41, %v2654_v27 }
 0xffd   :  { %v1874_v5 = vpop.eup %1873 }
 0xffe   :  { %1193 = vrot.lane.b32.xlu1 %v1874_v5, %s2109_s3 }
0x106e   :  { %v1170_v11 = vpop.permute.xlu0 %1169 }
0x106f   :  { %v2671_v0 = vmul.f32 %v2634_v14, %v1170_v11 }
0x1070   :  { %v1194_v12 = vpop.permute.xlu1 %1193 }
0x1071   :  { %v2678_v13 = vsel %vm1201_vm10, %v2671_v0, %v2614_v28  ;;  %v2681_v15 = vmul.f32 %v2637_v17, %v1194_v12  ;;  %v1325_v17 = vld [vmem:[#allocation6 + $0x30] sm:$0xff] }
0x1072   :  { %1226 = vrot.lane.b32.xlu0 %v2678_v13, %s2107_s0 }
0x1073   :  { %v2690_v14 = vsel %vm1213_vm11, %v2681_v15, %v2625_v35  ;;  %v1214_v48 = vsel %vm1213_vm11, %v2681_v15, -1.0 }
0x1074   :  { %1230 = vrot.lane.b32.xlu1 %v2690_v14, %s2109_s3 }
0x10e4   :  { %v1227_v16 = vpop.permute.xlu0 %1226 }
0x10e6   :  { %v1231_v28 = vpop.permute.xlu1 %1230 }
0x10e7   :  { %v1233_v24 = vsel %vm80_vm0, %v1227_v16, %v1231_v28 }
0x10e8   :  { %1749 = vmatmul.mubr.msk.f32.vlgmr.msra.gmra.mxu0 %vm115_vm1, %v1233_v24 }
0x11a8   :  { %v1319_v36 = vpop.f32.mrf.mxu0 }
0x11a9   :  { %v1326_v52 = vadd.f32 %v1325_v17, %v1319_v36 }
0x11aa   :  { %v1321_v47 = vpop.f32.mrf.mxu0 }
0x11ab   :  { %1875 = vtanh.f32 %v1326_v52  ;;  %v1329_v60 = vadd.f32 %v1328_v40, %v1321_v47  ;;  %v1752_v54 = vmul.f32 -1.442695, %v1326_v52  ;;  %v1512_v47 = vld [vmem:[#allocation6 + $0x38] sm:$0xff] }
0x11ad   :  { %1877 = vtanh.f32 %v1329_v60  ;;  %v1753_v43 = vmul.f32 -1.442695, %v1329_v60 }
0x11ae   :  { %1879 = vpow2.f32 %v1752_v54 }
0x11af   :  { %1881 = vpow2.f32 %v1753_v43 }
0x11b8   :  { %v1876_v39 = vpop.eup %1875 }
0x11b9   :  { %1345 = vrot.lane.b32.xlu0 %v1876_v39, %s2109_s3  ;;  %v1514_v39 = vld [vmem:[#allocation9] sm:$0xff] }
0x11ba   :  { %v1878_v35 = vpop.eup %1877 }
0x11bb   :  { %1369 = vrot.lane.b32.xlu1 %v1878_v35, %s2109_s3  ;;  %v1880_v50 = vpop.eup %1879 }
0x11bc   :  { %v1882_v53 = vpop.eup %1881  ;;  %v1339_v62 = vadd.f32 1.0, %v1880_v50 }
0x11bd   :  { %v1363_v21 = vadd.f32 1.0, %v1882_v53 }
0x11be   :  { %1883 = vrcp.f32 %v1339_v62 }
0x11bf   :  { %1885 = vrcp.f32 %v1363_v21 }
0x11cb   :  { %v1884_v32 = vpop.eup %1883 }
0x11cc   :  { %v1886_v2 = vpop.eup %1885  ;;  %v1343_v7 = vmul.f32 %v1884_v32, %v2706_v6 }
0x122b   :  { %v1346_v22 = vpop.permute.xlu0 %1345 }
0x122c   :  { %v1348_v56 = vmul.f32 %v1884_v32, %v1346_v22 }
0x122d   :  { %v1370_v3 = vpop.permute.xlu1 %1369 }
0x122e   :  { %1350 = vrot.lane.b32.xlu0 %v1348_v56, %s2107_s0  ;;  %v1372_v5 = vmul.f32 %v1886_v2, %v1370_v3 }
0x1230   :  { %1374 = vrot.lane.b32.xlu1 %v1372_v5, %s2107_s0 }
0x1232   :  { %1386 = vperm.xlu0 %1778, %v2379_v49   ;;  %v1367_v49 = vmul.f32 %v1886_v2, %v2713_v31 }
0x1234   :  { %1398 = vperm.xlu1 %1777, %v2373_v44  }
0x12a0   :  { %v1351_v34 = vpop.permute.xlu0 %1350 }
0x12a1   :  { %v1353_v8 = vadd.f32 %v1351_v34, %v1343_v7 }
0x12a2   :  { %v1375_v44 = vpop.permute.xlu1 %1374 }
0x12a3   :  { %1887 = vtanh.f32 %v1353_v8  ;;  %v1377_v11 = vadd.f32 %v1375_v44, %v1367_v49 }
0x12a5   :  { %1889 = vtanh.f32 %v1377_v11 }
0x12ad   :  { %v2718_v42 = vpop.permute.xlu0 %1386 }
0x12ae   :  { %vm1388_vm14 = vcmp.eq.s32.totalorder %v2718_v42, 1 }
0x12af   :  { %v2720_v16 = vpop.permute.xlu1 %1398  ;;  %v1409_v44 = vsel %vm1388_vm14, %v1353_v8, %v2706_v6  ;;  %v466_v6 = vsel %vm465_vm9, %v2417_v23, -1.0  ;;  %v840_v8 = vsel %vm839_vm3, %v2568_v63, -1.0  ;;  %v1202_v63 = vsel %vm1201_vm10, %v2671_v0, -1.0 }
0x12b0   :  { %v1888_v12 = vpop.eup %1887  ;;  %vm1400_vm15 = vcmp.eq.s32.totalorder %v2720_v16, 1 }
0x12b1   :  { %1356 = vrot.lane.b32.xlu0 %v1888_v12, %s2109_s3 }
0x12b2   :  { %v1890_v37 = vpop.eup %1889 }
0x12b3   :  { %1380 = vrot.lane.b32.xlu1 %v1890_v37, %s2109_s3 }
0x1323   :  { %v1357_v28 = vpop.permute.xlu0 %1356 }
0x1324   :  { %v2722_v27 = vmul.f32 %v1884_v32, %v1357_v28  ;;  %v2758_v28 = vsel %vm1400_vm15, %v1377_v11, %v2713_v31  ;;  %v272_v31 = vsel %vm271_vm5, %v2339_v4, -1.0  ;;  %v653_v11 = vsel %vm652_vm13, %v2497_v33, -1.0 }
0x1325   :  { %v1381_v41 = vpop.permute.xlu1 %1380  ;;  %v261_v4 = vsel %vm260_vm4, %v2329_v61, -1.0  ;;  %v641_v33 = vsel %vm640_vm12, %v2488_v30, -1.0  ;;  %v454_v61 = vsel %vm453_vm8, %v2408_v20, -1.0  ;;  %v828_v30 = vsel %vm827_vm2, %v2559_v25, -1.0 }
0x1326   :  { %v2729_v24 = vsel %vm1388_vm14, %v2722_v27, %v2678_v13  ;;  %v2731_v17 = vmul.f32 %v1886_v2, %v1381_v41  ;;  %v1389_v29 = vsel %vm1388_vm14, %v2722_v27, -1.0 }
0x1327   :  { %1413 = vrot.lane.b32.xlu0 %v2729_v24, %s2107_s0 }
0x1328   :  { %v2740_v36 = vsel %vm1400_vm15, %v2731_v17, %v2690_v14  ;;  %v1401_v55 = vsel %vm1400_vm15, %v2731_v17, -1.0 }
0x1329   :  { %1417 = vrot.lane.b32.xlu1 %v2740_v36, %s2109_s3 }
0x1399   :  { %v1414_v40 = vpop.permute.xlu0 %1413 }
0x139b   :  { %v1418_v52 = vpop.permute.xlu1 %1417 }
0x139c   :  { %v1420_v13 = vsel %vm80_vm0, %v1414_v40, %v1418_v52 }
0x139d   :  { %1754 = vmatmul.mubr.msk.f32.vlgmr.msra.gmra.mxu1 %vm115_vm1, %v1420_v13 }
0x145d   :  { %v1506_v60 = vpop.f32.mrf.mxu1 }
0x145e   :  { %v1513_v35 = vadd.f32 %v1512_v47, %v1506_v60 }
0x145f   :  { %v1508_v54 = vpop.f32.mrf.mxu1 }
0x1460   :  { %1891 = vtanh.f32 %v1513_v35  ;;  %v1515_v43 = vadd.f32 %v1514_v39, %v1508_v54  ;;  %v1757_v53 = vmul.f32 -1.442695, %v1513_v35 }
0x1462   :  { %1893 = vtanh.f32 %v1515_v43  ;;  %v1758_v62 = vmul.f32 -1.442695, %v1515_v43 }
0x1463   :  { %1895 = vpow2.f32 %v1757_v53 }
0x1464   :  { %1897 = vpow2.f32 %v1758_v62 }
0x146d   :  { %v1892_v50 = vpop.eup %1891 }
0x146e   :  { %1530 = vrot.lane.b32.xlu1 %v1892_v50, %s2109_s3 }
0x146f   :  { %v1894_v14 = vpop.eup %1893 }
0x1470   :  { %1554 = vrot.lane.b32.xlu0 %v1894_v14, %s2109_s3  ;;  %v1896_v21 = vpop.eup %1895 }
0x1471   :  { %v1898_v32 = vpop.eup %1897  ;;  %v1524_v22 = vadd.f32 1.0, %v1896_v21 }
0x1472   :  { %v1548_v56 = vadd.f32 1.0, %v1898_v32 }
0x1473   :  { %1899 = vrcp.f32 %v1524_v22 }
0x1474   :  { %1901 = vrcp.f32 %v1548_v56 }
0x1480   :  { %v1900_v2 = vpop.eup %1899 }
0x1481   :  { %v1902_v7 = vpop.eup %1901  ;;  %v1528_v12 = vmul.f32 %v1900_v2, %v1409_v44 }
0x1482   :  { %v1552_v40 = vmul.f32 %v1902_v7, %v2758_v28 }
0x14e0   :  { %v1531_v3 = vpop.permute.xlu1 %1530 }
0x14e1   :  { %v1533_v5 = vmul.f32 %v1900_v2, %v1531_v3 }
0x14e2   :  { %v1555_v34 = vpop.permute.xlu0 %1554 }
0x14e3   :  { %1535 = vrot.lane.b32.xlu1 %v1533_v5, %s2107_s0  ;;  %v1557_v49 = vmul.f32 %v1902_v7, %v1555_v34 }
0x14e5   :  { %1559 = vrot.lane.b32.xlu0 %v1557_v49, %s2107_s0 }
0x14e7   :  { %1583 = vperm.xlu1 %1777, %v2298_v45  }
0x14e9   :  { %1571 = vperm.xlu0 %1778, %v2304_v46  }
0x1555   :  { %v1536_v37 = vpop.permute.xlu1 %1535 }
0x1556   :  { %v1538_v41 = vadd.f32 %v1536_v37, %v1528_v12 }
0x1557   :  { %v1560_v52 = vpop.permute.xlu0 %1559 }
0x1558   :  { %1903 = vtanh.f32 %v1538_v41  ;;  %v1562_v13 = vadd.f32 %v1560_v52, %v1552_v40 }
0x155a   :  { %1905 = vtanh.f32 %v1562_v13 }
0x1562   :  { %v1584_v18 = vpop.permute.xlu1 %1583 }
0x1563   :  { %vm1585_vm4 = vcmp.eq.s32.totalorder %v1584_v18, 1 }
0x1564   :  { %v1572_v23 = vpop.permute.xlu0 %1571  ;;  %v1595_v42 = vsel %vm1585_vm4, %v1562_v13, %v2758_v28 }
0x1565   :  { %v1904_v45 = vpop.eup %1903  ;;  %vm1573_vm1 = vcmp.eq.s32.totalorder %v1572_v23, 1 }
0x1566   :  { %1541 = vrot.lane.b32.xlu1 %v1904_v45, %s2109_s3  ;;  %v1593_v19 = vsel %vm1573_vm1, %v1538_v41, %v1409_v44 }
0x1567   :  { %v1906_v46 = vpop.eup %1905 }
0x1568   :  { %1565 = vrot.lane.b32.xlu0 %v1906_v46, %s2109_s3 }
0x156a   :  { %468 = vrot.lane.b32.xlu1 %v466_v6, %s2107_s0 }
0x156c   :  { %274 = vrot.lane.b32.xlu0 %v272_v31, %s2107_s0 }
0x156e   :  { %842 = vrot.lane.b32.xlu1 %v840_v8, %s2107_s0 }
0x1570   :  { %655 = vrot.lane.b32.xlu0 %v653_v11, %s2107_s0 }
0x1572   :  { %1216 = vrot.lane.b32.xlu1 %v1214_v48, %s2107_s0 }
0x1574   :  { %1029 = vrot.lane.b32.xlu0 %v1027_v58, %s2107_s0 }
0x1576   :  { %263 = vrot.lane.b32.xlu1 %v261_v4, %s2107_s0 }
0x1578   :  { %1403 = vrot.lane.b32.xlu0 %v1401_v55, %s2107_s0 }
0x157a   :  { %643 = vrot.lane.b32.xlu1 %v641_v33, %s2107_s0 }
0x157c   :  { %1602 = vrot.lane.b32.xlu0 %v1593_v19, %s2110_s2 }
0x157e   :  { %1017 = vrot.lane.b32.xlu1 %v1015_v57, %s2107_s0 }
0x1580   :  { %456 = vrot.lane.b32.xlu0 %v454_v61, %s2107_s0 }
0x1582   :  { %1391 = vrot.lane.b32.xlu1 %v1389_v29, %s2107_s0 }
0x1584   :  { %830 = vrot.lane.b32.xlu0 %v828_v30, %s2107_s0 }
0x1588   :  { %1204 = vrot.lane.b32.xlu0 %v1202_v63, %s2107_s0 }
0x15d8   :  { %v1542_v20 = vpop.permute.xlu1 %1541 }
0x15d9   :  { %v1544_v59 = vmul.f32 %v1900_v2, %v1542_v20 }
0x15da   :  { %v1566_v38 = vpop.permute.xlu0 %1565 }
0x15db   :  { %v1574_v51 = vsel %vm1573_vm1, %v1544_v59, -1.0  ;;  %v1592_v1 = vsel %vm1573_vm1, %v1544_v59, %v2729_v24  ;;  %v1568_v10 = vmul.f32 %v1902_v7, %v1566_v38 }
0x15dc   :  { %1576 = vrot.lane.b32.xlu0 %v1574_v51, %s2107_s0  ;;  %1597 = vrot.lane.b32.xlu1 %v1592_v1, %s2107_s0  ;;  %v469_v26 = vpop.permute.xlu1 %468 }
0x15dd   :  { %472 = vst.msk [vmem:[#allocation13 + $0x30] sm:$0xff] %vm80_vm0, %v469_v26  ;;  %v1586_v25 = vsel %vm1585_vm4, %v1568_v10, -1.0  ;;  %v1594_v0 = vsel %vm1585_vm4, %v1568_v10, %v2740_v36 }
0x15de   :  { %v275_v9 = vpop.permute.xlu0 %274 }
0x15df   :  { %278 = vst.msk [vmem:[#allocation13 + $0x38] sm:$0xff] %vm80_vm0, %v275_v9 }
0x15e0   :  { %1607 = vrot.lane.b32.xlu0 %v1594_v0, %s2107_s0  ;;  %1588 = vrot.lane.b32.xlu1 %v1586_v25, %s2107_s0  ;;  %v843_v15 = vpop.permute.xlu1 %842 }
0x15e1   :  { %846 = vst.msk [vmem:[#allocation13 + $0x20] sm:$0xff] %vm80_vm0, %v843_v15 }
0x15e2   :  { %v656_v16 = vpop.permute.xlu0 %655 }
0x15e3   :  { %659 = vst.msk [vmem:[#allocation13 + $0x28] sm:$0xff] %vm80_vm0, %v656_v16 }
0x15e4   :  { %1612 = vrot.lane.b32.xlu1 %v1595_v42, %s2110_s2  ;;  %v1217_v27 = vpop.permute.xlu1 %1216 }
0x15e5   :  { %1220 = vst.msk [vmem:[#allocation13 + $0x10] sm:$0xff] %vm80_vm0, %v1217_v27 }
0x15e6   :  { %v1030_v24 = vpop.permute.xlu0 %1029 }
0x15e7   :  { %1033 = vst.msk [vmem:[#allocation13 + $0x18] sm:$0xff] %vm80_vm0, %v1030_v24 }
0x15e8   :  { %v264_v17 = vpop.permute.xlu1 %263 }
0x15e9   :  { %266 = vst.msk [vmem:[#allocation12] sm:$0xff] %vm80_vm0, %v264_v17 }
0x15ea   :  { %v1404_v36 = vpop.permute.xlu0 %1403 }
0x15eb   :  { %1407 = vst.msk [vmem:[#allocation13 + $0x8] sm:$0xff] %vm80_vm0, %v1404_v36 }
0x15ec   :  { %v644_v47 = vpop.permute.xlu1 %643 }
0x15ed   :  { %647 = vst.msk [vmem:[#allocation12 + $0x10] sm:$0xff] %vm80_vm0, %v644_v47 }
0x15ee   :  { %v1603_v60 = vpop.permute.xlu0 %1602 }
0x15ef   :  { %1605 = vst.msk [vmem:[#allocation3] sm:$0xff] %vm80_vm0, %v1603_v60  ;;  %1620 = vst.msk [vmem:[#allocation16] sm:$0xff] %vm80_vm0, %v1603_v60 }
0x15f0   :  { %v1018_v39 = vpop.permute.xlu1 %1017 }
0x15f1   :  { %1021 = vst.msk [vmem:[#allocation12 + $0x20] sm:$0xff] %vm80_vm0, %v1018_v39 }
0x15f2   :  { %1978 = shalt.err (!%p1975_p5)
}
0x15f3   :  { %1670 = dma.vmem_to_hbm [thread:$0]  %s1668_s30, 128, %s2893_s7, [#allocation17]   ;;  %v457_v35 = vpop.permute.xlu0 %456 }
0x15f4   :  { %460 = vst.msk [vmem:[#allocation12 + $0x8] sm:$0xff] %vm80_vm0, %v457_v35  ;;  %v1392_v54 = vpop.permute.xlu1 %1391  ;;  %s2112_s13 = smov [#allocation12]   ;;  %s2113_s17 = smov [#allocation13]  }
0x15f5   :  { %1395 = vst.msk [vmem:[#allocation12 + $0x30] sm:$0xff] %vm80_vm0, %v1392_v54  ;;  %s1628_s16 = sshll.u32 %s2112_s13, 4  ;;  %s1644_s18 = sshll.u32 %s2113_s17, 4  ;;  %s1629_s16 = int_to_ptr.vmem [resolvable:$true] %s1628_s16  ;;  %s1645_s18 = int_to_ptr.vmem [resolvable:$true] %s1644_s18 }
0x15f6   :  { %s2114_s7 = smov [#allocation15]   ;;  %s2115_s20 = smov [#allocation18]  }
0x15f7   :  { %v831_v43 = vpop.permute.xlu0 %830  ;;  %s1657_s19 = sshll.u32 %s2114_s7, 4  ;;  %s1677_s21 = sshll.u32 %s2115_s20, 4  ;;  %s1658_s19 = int_to_ptr.vmem [resolvable:$true] %s1657_s19  ;;  %s1678_s21 = int_to_ptr.vmem [resolvable:$true] %s1677_s21 }
0x15f8   :  { %834 = vst.msk [vmem:[#allocation12 + $0x18] sm:$0xff] %vm80_vm0, %v831_v43  ;;  %s2116_s22 = smov [#allocation19]   ;;  %s1987_s1 = scalar_lea.vmem %s1629_s16, 1024 }
0x15f9   :  { %s1687_s23 = sshll.u32 %s2116_s22, 4  ;;  %p1988_p6 = scmp.ne.s32.totalorder %s1629_s16, %s1987_s1  ;;  %s2862_s23 = int_to_ptr.vmem [resolvable:$true] %s1687_s23 }
0x15fa   :  { %p1992_p7 = scmp.lt.s32.totalorder %s1629_s16, %s1629_s16  ;;  %p1993_p8 = scmp.lt.s32.totalorder %s1987_s1, %s1987_s1 }
0x15fb   :  { %v1205_v50 = vpop.permute.xlu0 %1204 }
0x15fc   :  { %1208 = vst.msk [vmem:[#allocation12 + $0x28] sm:$0xff] %vm80_vm0, %v1205_v50  ;;  %p1994_p9 = por %p1993_p8, %p1992_p7 }
0x15fe   :  { %p1995_p10 = pnand %p1994_p9, %p1988_p6 }
0x164e   :  { %v1577_v14 = vpop.permute.xlu0 %1576  ;;  %v1598_v53 = vpop.permute.xlu1 %1597 }
0x164f   :  { %1580 = vst.msk [vmem:[#allocation12 + $0x38] sm:$0xff] %vm80_vm0, %v1577_v14  ;;  %1600 = vst.msk [vmem:[#allocation2] sm:$0xff] %vm80_vm0, %v1598_v53 }
0x1650   :  { %1619 = vst.msk [vmem:[#allocation15] sm:$0xff] %vm80_vm0, %v1598_v53 }
0x1651   :  { %1998 = shalt.err (!%p1995_p10)
}
0x1652   :  { %1634 = dma.vmem_to_hbm [thread:$0]  %s1629_s16, 1024, %s2890_s4, [#allocation8], %s2101_s14, %s2101_s14, %s2102_s15   ;;  %v1608_v62 = vpop.permute.xlu0 %1607  ;;  %v1589_v21 = vpop.permute.xlu1 %1588 }
0x1653   :  { %1610 = vst.msk [vmem:[#allocation4] sm:$0xff] %vm80_vm0, %v1608_v62  ;;  %1621 = vst.msk [vmem:[#allocation18] sm:$0xff] %vm80_vm0, %v1608_v62  ;;  %s2007_s26 = scalar_lea.vmem %s1645_s18, 1024  ;;  %p2012_p12 = scmp.lt.s32.totalorder %s1645_s18, %s1645_s18 }
0x1654   :  { %1591 = vst.msk [vmem:[#allocation13] sm:$0xff] %vm80_vm0, %v1589_v21  ;;  %p2008_p11 = scmp.ne.s32.totalorder %s1645_s18, %s2007_s26  ;;  %p2013_p13 = scmp.lt.s32.totalorder %s2007_s26, %s2007_s26 }
0x1656   :  { %p2014_p0 = por %p2013_p13, %p2012_p12 }
0x1658   :  { %p2015_p1 = pnand %p2014_p0, %p2008_p11 }
0x165a   :  { %2018 = shalt.err (!%p2015_p1)
}
0x165b   :  { %1650 = dma.vmem_to_hbm [thread:$0]  %s1645_s18, 1024, %s2891_s5, [#allocation14], %s2101_s14, %s2101_s14, %s2102_s15  }
0x165c   :  { %s2027_s3 = scalar_lea.vmem %s1658_s19, 128  ;;  %p2032_p3 = scmp.lt.s32.totalorder %s1658_s19, %s1658_s19 }
0x165d   :  { %p2028_p2 = scmp.ne.s32.totalorder %s1658_s19, %s2027_s3  ;;  %p2033_p4 = scmp.lt.s32.totalorder %s2027_s3, %s2027_s3 }
0x165f   :  { %p2034_p5 = por %p2033_p4, %p2032_p3 }
0x1661   :  { %p2035_p6 = pnand %p2034_p5, %p2028_p2 }
0x1663   :  { %2038 = shalt.err (!%p2035_p6)
}
0x1664   :  { %1660 = dma.vmem_to_hbm [thread:$0]  %s1658_s19, 128, %s2892_s6, [#allocation14]   ;;  %v1613_v32 = vpop.permute.xlu1 %1612 }
0x1665   :  { %s2047_s2 = scalar_lea.vmem %s1678_s21, 128  ;;  %p2052_p8 = scmp.lt.s32.totalorder %s1678_s21, %s1678_s21 }
0x1666   :  { %p2048_p7 = scmp.ne.s32.totalorder %s1678_s21, %s2047_s2  ;;  %p2053_p9 = scmp.lt.s32.totalorder %s2047_s2, %s2047_s2 }
0x1668   :  { %p2054_p10 = por %p2053_p9, %p2052_p8 }
0x166a   :  { %p2055_p11 = pnand %p2054_p10, %p2048_p7 }
0x166c   :  { %2058 = shalt.err (!%p2055_p11)
}
0x166d   :  { %1680 = dma.vmem_to_hbm [thread:$0]  %s1678_s21, 128, %s2894_s8, [#allocation17]   ;;  %1615 = vst.msk [vmem:[#allocation5] sm:$0xff] %vm80_vm0, %v1613_v32  ;;  %1622 = vst.msk [vmem:[#allocation19] sm:$0xff] %vm80_vm0, %v1613_v32 }
0x166e   :  { %s2067_s6 = scalar_lea.vmem %s2862_s23, 128  ;;  %p2072_p13 = scmp.lt.s32.totalorder %s2862_s23, %s2862_s23 }
0x166f   :  { %p2068_p12 = scmp.ne.s32.totalorder %s2862_s23, %s2067_s6  ;;  %p2073_p0 = scmp.lt.s32.totalorder %s2067_s6, %s2067_s6 }
0x1671   :  { %p2074_p1 = por %p2073_p0, %p2072_p13 }
0x1673   :  { %p2075_p2 = pnand %p2074_p1, %p2068_p12 }
0x1675   :  { %2078 = shalt.err (!%p2075_p2)
}
0x1676   :  { %1690 = dma.vmem_to_hbm [thread:$0]  %s2862_s23, 128, %s2895_s9, [#allocation20]  }
0x1677   :  { %2091 = dma.done.wait [#allocation8], 1024  }
0x1678   :  { %2092 = vsyncadd [#allocation8], 4294966272 }
0x1679   :  { %2093 = dma.done.wait [#allocation14], 1152  }
0x167a   :  { %2094 = vsyncadd [#allocation14], 4294966144 }
0x167b   :  { %2095 = dma.done.wait [#allocation17], 256  }
0x167c   :  { %2096 = vsyncadd [#allocation17], 4294967040 }
0x167d   :  { %2097 = dma.done.wait [#allocation20], 128  }
0x167e   :  { %2098 = vsyncadd [#allocation20], 4294967168 }
0x167f   :  { %1709 = vsyncpa [#allocation7], 1 }
0x1680   :  { %1710 = vsyncpa [#allocation10], 1 }
0x1681   :  { %1711 = vsyncpa [#allocation8], 1 }
0x1682   :  { %1712 = vsyncpa [#allocation14], 1 }
0x1683   :  { %1713 = vsyncpa [#allocation17], 1 }
0x1684   :  { %1714 = vsyncpa [#allocation20], 1 }

</bundles_post_ra>
